<compile_context>
chip_gen: v7x
topology: tpu7x:2x2x1
jax: 0.10.0
libtpu: 0.0.40
codegen_flags: <defaults>
</compile_context>

<pallas_src>
import numpy as np
import jax
import jax.numpy as jnp
from jax.experimental import pallas as pl
from jax.experimental.pallas import tpu as pltpu

BN_EPS = 1e-5
BN_SCALE = float(1.0 / np.sqrt(1.0 + BN_EPS))   # gamma / sqrt(running_var + eps)
BN_BIAS = 1e-4                                  # beta   (running_mean = 0, conv bias = 0)

KERNEL_LIST = ['id', 3, 5, 7]
ACT_DTYPE = jnp.bfloat16                        # HBM activations / MXU operands
VMEM_LIMIT = 32 * 1024 * 1024

_MEAN = np.array([0.485, 0.456, 0.406], np.float32)
_STD = np.array([0.229, 0.224, 0.225], np.float32)


# ----------------------------- Pallas kernel ----------------------------------

def _make_vgg_block_kernel(H, W, K, c_ins, c_mid, c_out, normalize):
    """Fused block: [normalize] -> convK+BN+ReLU -> convK+BN+ReLU, one image/step.

    Activations are packed (H, W*C) (lane-dense); each conv is K row-band MXU
    matmuls against block-Toeplitz weights (Wp*Cin, W*Cout) built in the wrapper.
    The channel-concat of multiple inputs is realized by accumulating one matmul
    group per input into the same f32 tile (no concat tensor, no interleave).
    """
    p = (K - 1) // 2
    n_in = len(c_ins)

    def kernel(*refs):
        idx = 0
        x_refs = refs[idx:idx + n_in]; idx += n_in
        if normalize:
            nsc_ref, nsh_ref = refs[idx], refs[idx + 1]; idx += 2
        t1_refs = refs[idx:idx + n_in]; idx += n_in
        b1_ref = refs[idx]; idx += 1
        t2_ref = refs[idx]; idx += 1
        b2_ref = refs[idx]; idx += 1
        o_ref = refs[idx]; idx += 1
        pad1 = refs[idx:idx + n_in]; idx += n_in
        pad2 = refs[idx]

        # ---- stage inputs into zero-padded halo slabs (lane-dense bf16) ----
        # Whole-slab zero is a few vregs in this packed layout and is redone each
        # step so the kernel is correct under megacore partitioning of grid=(N,).
        for x_ref, c, pad in zip(x_refs, c_ins, pad1):
            pad[...] = jnp.zeros_like(pad)
            v = x_ref[0]
            if normalize:  # stem: fused (x/255 - mean) / std, then zero halo (exact)
                v = v.astype(jnp.float32) * nsc_ref[...] + nsh_ref[...]
            pad[p:p + H, p * c:(p + W) * c] = v.astype(pad.dtype)

        # ---- conv1 (+folded BN) + ReLU: K row-band matmuls per input ----
        acc = jnp.zeros((H, W * c_mid), jnp.float32)
        for pad, t_ref in zip(pad1, t1_refs):
            for kh in range(K):
                acc = acc + jnp.dot(pad[kh:kh + H, :], t_ref[kh],
                                    preferred_element_type=jnp.float32)
        y = jnp.maximum(acc + b1_ref[...], 0.0)

        # ---- conv2 (+folded BN) + ReLU (the c_mid intermediate never leaves VMEM) ----
        pad2[...] = jnp.zeros_like(pad2)
        pad2[p:p + H, p * c_mid:(p + W) * c_mid] = y.astype(pad2.dtype)
        acc = jnp.zeros((H, W * c_out), jnp.float32)
        for kh in range(K):
            acc = acc + jnp.dot(pad2[kh:kh + H, :], t2_ref[kh],
                                preferred_element_type=jnp.float32)
        y = jnp.maximum(acc + b2_ref[...], 0.0)
        o_ref[0] = y.astype(o_ref.dtype)

    return kernel


# ------------------------------ call wrapper -----------------------------------

def _const_spec(arr):
    nd = arr.ndim
    return pl.BlockSpec(arr.shape, lambda *args, _nd=nd: (0,) * _nd)


def vgg_block_call(inputs, prm, norm=None):
    """inputs: list of NHWC arrays (same N,H,W).  Returns (N,H,W,Cout) in ACT_DTYPE."""
    N, H, W, _ = inputs[0].shape
    c_ins = tuple(int(x.shape[-1]) for x in inputs)
    K, c_mid, c_out = prm['k'], prm['c_mid'], prm['c_out']
    Hp, Wp = H + K - 1, W + K - 1

    kernel = _make_vgg_block_kernel(H, W, K, c_ins, c_mid, c_out, norm is not None)

    # lane-dense (N, H, W*C) views of the activations (free reshape in HBM)
    operands = [x.reshape(N, H, W * c) for x, c in zip(inputs, c_ins)]
    in_specs = [pl.BlockSpec((1, H, W * c), lambda n: (n, 0, 0)) for c in c_ins]
    if norm is not None:
        nsc, nsh = norm
        operands += [nsc, nsh]
        in_specs += [_const_spec(nsc), _const_spec(nsh)]
    operands += list(prm['t1']) + [prm['b1'], prm['t2'], prm['b2']]
    in_specs += [_const_spec(t) for t in prm['t1']]
    in_specs += [_const_spec(prm['b1']), _const_spec(prm['t2']), _const_spec(prm['b2'])]

    scratch = [pltpu.VMEM((Hp, Wp * c), ACT_DTYPE) for c in c_ins]
    scratch += [pltpu.VMEM((Hp, Wp * c_mid), ACT_DTYPE)]

    out = pl.pallas_call(
        kernel,
        out_shape=jax.ShapeDtypeStruct((N, H, W * c_out), ACT_DTYPE),
        grid=(N,),
        in_specs=in_specs,
        out_specs=pl.BlockSpec((1, H, W * c_out), lambda n: (n, 0, 0)),
        scratch_shapes=scratch,
        compiler_params=pltpu.CompilerParams(
            dimension_semantics=("parallel",),
            vmem_limit_bytes=VMEM_LIMIT),
    )(*operands)
    return out.reshape(N, H, W, c_out)


# ------------------------------ JAX glue ops ------------------------------------

def identity_block_xla(inputs, w, b):
    # TODO(synk): Identity ('id') choice assumed to be 1x1 conv + BN (no ReLU);
    #             Cout<=32 is lane-sparse, so it runs in plain XLA per perf guidance.
    x = jnp.concatenate([i.astype(jnp.float32) for i in inputs], axis=-1)
    y = jnp.einsum('nhwc,cd->nhwd', x, w) + b
    return y.astype(ACT_DTYPE)


def max_pool_2x2(x):
    # TODO(synk): kept in XLA; in-kernel fusion only pays at production resolutions.
    N, H, W, C = x.shape
    return x.reshape(N, H // 2, 2, W // 2, 2, C).max(axis=(2, 4))


def _upsample_matrix(n_in):
    # nn.UpsamplingBilinear2d(scale_factor=2) => align_corners=True
    n_out = 2 * n_in
    if n_in == 1:
        return jnp.ones((n_out, 1), jnp.float32)
    src = np.arange(n_out) * (n_in - 1) / (n_out - 1)
    lo = np.floor(src).astype(np.int32)
    hi = np.minimum(lo + 1, n_in - 1)
    frac = (src - lo).astype(np.float32)
    M = np.zeros((n_out, n_in), np.float32)
    M[np.arange(n_out), lo] += 1.0 - frac
    M[np.arange(n_out), hi] += frac
    return jnp.asarray(M)


def upsample_bilinear_2x(x):
    # TODO(synk): kept in XLA; the concat with the skip is fused inside the Pallas block.
    N, H, W, C = x.shape
    Mh = _upsample_matrix(H)
    Mw = _upsample_matrix(W)
    y = jnp.einsum('ph,nhwc->npwc', Mh, x)
    y = jnp.einsum('qw,npwc->npqc', Mw, y)
    return y.astype(ACT_DTYPE)


# --------------------------- parameters / folding --------------------------------

def init_conv_weight(key, k, cin, cout):
    # PyTorch init: nn.init.normal_(m.weight, 0, 1.0 / m.weight.shape[1])  (= 1/Cin)
    return (1.0 / cin) * jax.random.normal(key, (k, k, cin, cout), jnp.float32)


def toeplitz_from_conv(w, w_spatial):
    """(K,K,Cin,Cout) conv weight -> (K, (W+K-1)*Cin, W*Cout) block-Toeplitz weights
    for the row-band matmul formulation (SAME padding, stride 1, cross-correlation)."""
    w = np.asarray(w, np.float32)
    K, _, cin, cout = w.shape
    wp = w_spatial + K - 1
    t = np.zeros((K, wp * cin, w_spatial * cout), np.float32)
    wk = w.reshape(K, K * cin, cout)
    for wo in range(w_spatial):
        t[:, wo * cin:(wo + K) * cin, wo * cout:(wo + 1) * cout] = wk
    return jnp.asarray(t, ACT_DTYPE)


def init_model(key, num_classes, layers, input_channels=3, base_size=8, input_size=32):
    assert layers % 2 == 0
    nb = [base_size, base_size * 2, base_size * 4, base_size * 8, base_size * 16]
    sl = layers // 2
    keys = iter(jax.random.split(key, 256))

    def vgg_params(c_ins, cmid, cout, k, wsp):
        cin = sum(c_ins)
        w1 = init_conv_weight(next(keys), k, cin, cmid) * BN_SCALE   # fold BN scale
        w2 = init_conv_weight(next(keys), k, cmid, cout) * BN_SCALE
        t1, off = [], 0
        for ci in c_ins:   # split conv1 weight per (fused-away) concat input group
            t1.append(toeplitz_from_conv(w1[:, :, off:off + ci, :], wsp))
            off += ci
        return {'type': 'vgg', 'k': k, 'c_mid': cmid, 'c_out': cout,
                't1': t1,
                'b1': jnp.full((1, wsp * cmid), BN_BIAS, jnp.float32),
                't2': toeplitz_from_conv(w2, wsp),
                'b2': jnp.full((1, wsp * cout), BN_BIAS, jnp.float32)}

    def id_params(cin, cout):
        w = init_conv_weight(next(keys), 1, cin, cout).reshape(cin, cout) * BN_SCALE
        return {'type': 'id', 'w': w, 'b': BN_BIAS}

    def make_layer(c_ins, cout, wsp):
        return [id_params(sum(c_ins), cout) if j == 'id'
                else vgg_params(c_ins, cout, cout, j, wsp)
                for j in KERNEL_LIST]

    params = {'sample_layers': sl}
    params['stem'] = vgg_params((input_channels,), nb[0], nb[0], 3, input_size)
    # (x/255 - mean)/std  ==  x*nsc + nsh, tiled over the (w, c)-interleaved lanes.
    params['nsc'] = jnp.asarray(
        np.tile((1.0 / (255.0 * _STD)).astype(np.float32), input_size).reshape(1, -1),
        jnp.float32)
    params['nsh'] = jnp.asarray(
        np.tile((-_MEAN / _STD).astype(np.float32), input_size).reshape(1, -1),
        jnp.float32)

    cb = []
    for i in range(1, sl + 1):
        cb.append(make_layer((nb[i - 1],), nb[i], input_size // (2 ** i)))
    for i in range(sl):
        cb.append(make_layer((nb[sl - i - 1], nb[sl - i]), nb[sl - i - 1],
                             input_size // (2 ** (sl - i - 1))))
    params['cb'] = cb

    params['final_w'] = init_conv_weight(next(keys), 1, nb[0], num_classes).reshape(
        nb[0], num_classes)
    params['final_b'] = jnp.zeros((num_classes,), jnp.float32)
    return params


# -------------------------------- forward ----------------------------------------

def forward(params, x_nchw, choice):
    # input: NCHW (PyTorch convention) -> NHWC internally -> NCHW output
    x = jnp.transpose(x_nchw, (0, 2, 3, 1)).astype(jnp.float32)
    sl = params['sample_layers']

    x = vgg_block_call([x], params['stem'], norm=(params['nsc'], params['nsh']))

    x_down = []
    for i in range(sl):
        p = params['cb'][i][int(choice[i])]
        x_down.append(x)
        xp = max_pool_2x2(x)
        if p['type'] == 'id':
            x = identity_block_xla([xp], p['w'], p['b'])
        else:
            x = vgg_block_call([xp], p)

    for i in range(sl):
        p = params['cb'][sl + i][int(choice[sl + i])]
        skip = x_down[sl - i - 1]
        up = upsample_bilinear_2x(x)
        if p['type'] == 'id':
            x = identity_block_xla([skip, up], p['w'], p['b'])
        else:
            x = vgg_block_call([skip, up], p)

    # Final 1x1 classifier: Cout = num_classes (2) is lane-sparse; run it in plain XLA.
    out = jnp.einsum('nhwc,cd->nhwd', x.astype(jnp.float32), params['final_w'])
    out = out + params['final_b']
    return jnp.transpose(out, (0, 3, 1, 2))


# --------------------------------- main -------------------------------------------

if __name__ == "__main__":
    key = jax.random.PRNGKey(0)
    kp, kx = jax.random.split(key)

    num_classes, layers, input_channels, base_size = 2, 4, 3, 8
    params = init_model(kp, num_classes, layers, input_channels, base_size,
                        input_size=32)

    # Small deterministic uint8-range image; 32x32 keeps every level's packed lane
    # width a multiple of 128 (except the 96-lane raw stem input, which is full-dim).
    # Architecture choice exercising the fused-kernel variants: k5 VGG (1 input),
    # Identity (XLA), Identity with decoder concat (XLA), k7 VGG (2-input decoder
    # concat fused into the block) + k3 stem with fused normalization.
    x = jax.random.uniform(kx, (2, 3, 32, 32), jnp.float32, 0.0, 255.0)
    choice = (2, 0, 0, 3)

    out = forward(params, x, choice)
    out = jax.block_until_ready(out)
    assert out.shape == (2, num_classes, 32, 32), out.shape
    assert bool(jnp.all(jnp.isfinite(out)))
    print("KERNEL_OK")
</pallas_src>

<mosaic_0001>
module attributes {stable_mosaic.version = 11 : i64} {
  func.func @kernel(%arg0: i32, %arg1: memref<1x32x96xf32, #tpu.memory_space<vmem>>, %arg2: memref<1x96xf32, #tpu.memory_space<vmem>>, %arg3: memref<1x96xf32, #tpu.memory_space<vmem>>, %arg4: memref<3x102x256xbf16, #tpu.memory_space<vmem>>, %arg5: memref<1x256xf32, #tpu.memory_space<vmem>>, %arg6: memref<3x272x256xbf16, #tpu.memory_space<vmem>>, %arg7: memref<1x256xf32, #tpu.memory_space<vmem>>, %arg8: memref<1x32x256xbf16, #tpu.memory_space<vmem>>, %arg9: memref<34x102xbf16, #tpu.memory_space<vmem>>, %arg10: memref<34x272xbf16, #tpu.memory_space<vmem>>) attributes {dimension_semantics = [#tpu.dimension_semantics<parallel>], iteration_bounds = array<i64: 2>, scalar_prefetch = 0 : i64, scratch_operands = 2 : i64, tpu.core_type = #tpu.core_type<tc>, window_params = [{transform_indices = @transform_0, window_bounds = array<i64: 1, 32, 96>}, {pipeline_mode = #tpu.pipeline_mode<synchronous>, transform_indices = @transform_1, window_bounds = array<i64: 1, 96>}, {pipeline_mode = #tpu.pipeline_mode<synchronous>, transform_indices = @transform_2, window_bounds = array<i64: 1, 96>}, {pipeline_mode = #tpu.pipeline_mode<synchronous>, transform_indices = @transform_3, window_bounds = array<i64: 3, 102, 256>}, {pipeline_mode = #tpu.pipeline_mode<synchronous>, transform_indices = @transform_4, window_bounds = array<i64: 1, 256>}, {pipeline_mode = #tpu.pipeline_mode<synchronous>, transform_indices = @transform_5, window_bounds = array<i64: 3, 272, 256>}, {pipeline_mode = #tpu.pipeline_mode<synchronous>, transform_indices = @transform_6, window_bounds = array<i64: 1, 256>}, {transform_indices = @transform_7, window_bounds = array<i64: 1, 32, 256>}]} {
    %cst = arith.constant 0.000000e+00 : bf16
    %0 = vector.broadcast %cst : bf16 to vector<34x102xbf16>
    %c0 = arith.constant 0 : index
    %c0_0 = arith.constant 0 : index
    %1 = vector.load %arg9[%c0, %c0_0] : memref<34x102xbf16, #tpu.memory_space<vmem>>, vector<34x102xbf16>
    tpu.vector_store %arg9[%c0, %c0_0], %0 {strides = array<i32>} : memref<34x102xbf16, #tpu.memory_space<vmem>>, vector<34x102xbf16>,
    %c0_1 = arith.constant 0 : index
    %c0_2 = arith.constant 0 : index
    %c0_3 = arith.constant 0 : index
    %2 = vector.load %arg1[%c0_1, %c0_2, %c0_3] : memref<1x32x96xf32, #tpu.memory_space<vmem>>, vector<1x32x96xf32>
    %3 = vector.shape_cast %2 : vector<1x32x96xf32> to vector<32x96xf32>
    %c0_4 = arith.constant 0 : index
    %c0_5 = arith.constant 0 : index
    %4 = vector.load %arg2[%c0_4, %c0_5] : memref<1x96xf32, #tpu.memory_space<vmem>>, vector<1x96xf32>
    %5 = vector.broadcast %4 : vector<1x96xf32> to vector<32x96xf32>
    %6 = arith.mulf %3, %5 : vector<32x96xf32>
    %c0_6 = arith.constant 0 : index
    %c0_7 = arith.constant 0 : index
    %7 = vector.load %arg3[%c0_6, %c0_7] : memref<1x96xf32, #tpu.memory_space<vmem>>, vector<1x96xf32>
    %8 = vector.broadcast %7 : vector<1x96xf32> to vector<32x96xf32>
    %9 = arith.addf %6, %8 : vector<32x96xf32>
    %10 = arith.truncf %9 : vector<32x96xf32> to vector<32x96xbf16>
    %c1 = arith.constant 1 : index
    %c3 = arith.constant 3 : index
    %11 = vector.load %arg9[%c1, %c3] : memref<34x102xbf16, #tpu.memory_space<vmem>>, vector<32x96xbf16>
    tpu.vector_store %arg9[%c1, %c3], %10 {strides = array<i32>} : memref<34x102xbf16, #tpu.memory_space<vmem>>, vector<32x96xbf16>,
    %cst_8 = arith.constant 0.000000e+00 : f32
    %12 = vector.broadcast %cst_8 : f32 to vector<32x256xf32>
    %c0_9 = arith.constant 0 : index
    %c0_10 = arith.constant 0 : index
    %13 = vector.load %arg9[%c0_9, %c0_10] : memref<34x102xbf16, #tpu.memory_space<vmem>>, vector<32x102xbf16>
    %c0_11 = arith.constant 0 : index
    %c0_12 = arith.constant 0 : index
    %c0_13 = arith.constant 0 : index
    %14 = vector.load %arg4[%c0_11, %c0_12, %c0_13] : memref<3x102x256xbf16, #tpu.memory_space<vmem>>, vector<1x102x256xbf16>
    %15 = vector.shape_cast %14 : vector<1x102x256xbf16> to vector<102x256xbf16>
    %cst_14 = arith.constant dense<0.000000e+00> : vector<32x256xf32>
    %16 = tpu.matmul %13, %15, %cst_14 {dimension_numbers = #tpu.dot_dimension_numbers<[1], [0], [0], [1], [0, 0, 1, 1], [], []>} : vector<32x102xbf16>, vector<102x256xbf16>, vector<32x256xf32> -> vector<32x256xf32>
    %17 = arith.addf %12, %16 : vector<32x256xf32>
    %c1_15 = arith.constant 1 : index
    %c0_16 = arith.constant 0 : index
    %18 = vector.load %arg9[%c1_15, %c0_16] : memref<34x102xbf16, #tpu.memory_space<vmem>>, vector<32x102xbf16>
    %c1_17 = arith.constant 1 : index
    %c0_18 = arith.constant 0 : index
    %c0_19 = arith.constant 0 : index
    %19 = vector.load %arg4[%c1_17, %c0_18, %c0_19] : memref<3x102x256xbf16, #tpu.memory_space<vmem>>, vector<1x102x256xbf16>
    %20 = vector.shape_cast %19 : vector<1x102x256xbf16> to vector<102x256xbf16>
    %cst_20 = arith.constant dense<0.000000e+00> : vector<32x256xf32>
    %21 = tpu.matmul %18, %20, %cst_20 {dimension_numbers = #tpu.dot_dimension_numbers<[1], [0], [0], [1], [0, 0, 1, 1], [], []>} : vector<32x102xbf16>, vector<102x256xbf16>, vector<32x256xf32> -> vector<32x256xf32>
    %22 = arith.addf %17, %21 : vector<32x256xf32>
    %c2 = arith.constant 2 : index
    %c0_21 = arith.constant 0 : index
    %23 = vector.load %arg9[%c2, %c0_21] : memref<34x102xbf16, #tpu.memory_space<vmem>>, vector<32x102xbf16>
    %c2_22 = arith.constant 2 : index
    %c0_23 = arith.constant 0 : index
    %c0_24 = arith.constant 0 : index
    %24 = vector.load %arg4[%c2_22, %c0_23, %c0_24] : memref<3x102x256xbf16, #tpu.memory_space<vmem>>, vector<1x102x256xbf16>
    %25 = vector.shape_cast %24 : vector<1x102x256xbf16> to vector<102x256xbf16>
    %cst_25 = arith.constant dense<0.000000e+00> : vector<32x256xf32>
    %26 = tpu.matmul %23, %25, %cst_25 {dimension_numbers = #tpu.dot_dimension_numbers<[1], [0], [0], [1], [0, 0, 1, 1], [], []>} : vector<32x102xbf16>, vector<102x256xbf16>, vector<32x256xf32> -> vector<32x256xf32>
    %27 = arith.addf %22, %26 : vector<32x256xf32>
    %c0_26 = arith.constant 0 : index
    %c0_27 = arith.constant 0 : index
    %28 = vector.load %arg5[%c0_26, %c0_27] : memref<1x256xf32, #tpu.memory_space<vmem>>, vector<1x256xf32>
    %29 = vector.broadcast %28 : vector<1x256xf32> to vector<32x256xf32>
    %30 = arith.addf %27, %29 : vector<32x256xf32>
    %cst_28 = arith.constant 0.000000e+00 : f32
    %31 = vector.broadcast %cst_28 : f32 to vector<32x256xf32>
    %32 = arith.maximumf %30, %31 : vector<32x256xf32>
    %cst_29 = arith.constant 0.000000e+00 : bf16
    %33 = vector.broadcast %cst_29 : bf16 to vector<34x272xbf16>
    %c0_30 = arith.constant 0 : index
    %c0_31 = arith.constant 0 : index
    %34 = vector.load %arg10[%c0_30, %c0_31] : memref<34x272xbf16, #tpu.memory_space<vmem>>, vector<34x272xbf16>
    tpu.vector_store %arg10[%c0_30, %c0_31], %33 {strides = array<i32>} : memref<34x272xbf16, #tpu.memory_space<vmem>>, vector<34x272xbf16>,
    %35 = arith.truncf %32 : vector<32x256xf32> to vector<32x256xbf16>
    %c1_32 = arith.constant 1 : index
    %c8 = arith.constant 8 : index
    %36 = vector.load %arg10[%c1_32, %c8] : memref<34x272xbf16, #tpu.memory_space<vmem>>, vector<32x256xbf16>
    tpu.vector_store %arg10[%c1_32, %c8], %35 {strides = array<i32>} : memref<34x272xbf16, #tpu.memory_space<vmem>>, vector<32x256xbf16>,
    %cst_33 = arith.constant 0.000000e+00 : f32
    %37 = vector.broadcast %cst_33 : f32 to vector<32x256xf32>
    %c0_34 = arith.constant 0 : index
    %c0_35 = arith.constant 0 : index
    %38 = vector.load %arg10[%c0_34, %c0_35] : memref<34x272xbf16, #tpu.memory_space<vmem>>, vector<32x272xbf16>
    %c0_36 = arith.constant 0 : index
    %c0_37 = arith.constant 0 : index
    %c0_38 = arith.constant 0 : index
    %39 = vector.load %arg6[%c0_36, %c0_37, %c0_38] : memref<3x272x256xbf16, #tpu.memory_space<vmem>>, vector<1x272x256xbf16>
    %40 = vector.shape_cast %39 : vector<1x272x256xbf16> to vector<272x256xbf16>
    %cst_39 = arith.constant dense<0.000000e+00> : vector<32x256xf32>
    %41 = tpu.matmul %38, %40, %cst_39 {dimension_numbers = #tpu.dot_dimension_numbers<[1], [0], [0], [1], [0, 0, 1, 1], [], []>} : vector<32x272xbf16>, vector<272x256xbf16>, vector<32x256xf32> -> vector<32x256xf32>
    %42 = arith.addf %37, %41 : vector<32x256xf32>
    %c1_40 = arith.constant 1 : index
    %c0_41 = arith.constant 0 : index
    %43 = vector.load %arg10[%c1_40, %c0_41] : memref<34x272xbf16, #tpu.memory_space<vmem>>, vector<32x272xbf16>
    %c1_42 = arith.constant 1 : index
    %c0_43 = arith.constant 0 : index
    %c0_44 = arith.constant 0 : index
    %44 = vector.load %arg6[%c1_42, %c0_43, %c0_44] : memref<3x272x256xbf16, #tpu.memory_space<vmem>>, vector<1x272x256xbf16>
    %45 = vector.shape_cast %44 : vector<1x272x256xbf16> to vector<272x256xbf16>
    %cst_45 = arith.constant dense<0.000000e+00> : vector<32x256xf32>
    %46 = tpu.matmul %43, %45, %cst_45 {dimension_numbers = #tpu.dot_dimension_numbers<[1], [0], [0], [1], [0, 0, 1, 1], [], []>} : vector<32x272xbf16>, vector<272x256xbf16>, vector<32x256xf32> -> vector<32x256xf32>
    %47 = arith.addf %42, %46 : vector<32x256xf32>
    %c2_46 = arith.constant 2 : index
    %c0_47 = arith.constant 0 : index
    %48 = vector.load %arg10[%c2_46, %c0_47] : memref<34x272xbf16, #tpu.memory_space<vmem>>, vector<32x272xbf16>
    %c2_48 = arith.constant 2 : index
    %c0_49 = arith.constant 0 : index
    %c0_50 = arith.constant 0 : index
    %49 = vector.load %arg6[%c2_48, %c0_49, %c0_50] : memref<3x272x256xbf16, #tpu.memory_space<vmem>>, vector<1x272x256xbf16>
    %50 = vector.shape_cast %49 : vector<1x272x256xbf16> to vector<272x256xbf16>
    %cst_51 = arith.constant dense<0.000000e+00> : vector<32x256xf32>
    %51 = tpu.matmul %48, %50, %cst_51 {dimension_numbers = #tpu.dot_dimension_numbers<[1], [0], [0], [1], [0, 0, 1, 1], [], []>} : vector<32x272xbf16>, vector<272x256xbf16>, vector<32x256xf32> -> vector<32x256xf32>
    %52 = arith.addf %47, %51 : vector<32x256xf32>
    %c0_52 = arith.constant 0 : index
    %c0_53 = arith.constant 0 : index
    %53 = vector.load %arg7[%c0_52, %c0_53] : memref<1x256xf32, #tpu.memory_space<vmem>>, vector<1x256xf32>
    %54 = vector.broadcast %53 : vector<1x256xf32> to vector<32x256xf32>
    %55 = arith.addf %52, %54 : vector<32x256xf32>
    %cst_54 = arith.constant 0.000000e+00 : f32
    %56 = vector.broadcast %cst_54 : f32 to vector<32x256xf32>
    %57 = arith.maximumf %55, %56 : vector<32x256xf32>
    %58 = arith.truncf %57 : vector<32x256xf32> to vector<32x256xbf16>
    %c0_55 = arith.constant 0 : index
    %c0_56 = arith.constant 0 : index
    %c0_57 = arith.constant 0 : index
    %59 = vector.load %arg8[%c0_55, %c0_56, %c0_57] : memref<1x32x256xbf16, #tpu.memory_space<vmem>>, vector<1x32x256xbf16>
    %60 = vector.shape_cast %59 : vector<1x32x256xbf16> to vector<32x256xbf16>
    %61 = vector.shape_cast %58 : vector<32x256xbf16> to vector<1x32x256xbf16>
    tpu.vector_store %arg8[%c0_55, %c0_56, %c0_57], %61 {strides = array<i32>} : memref<1x32x256xbf16, #tpu.memory_space<vmem>>, vector<1x32x256xbf16>,
    return
  }
  func.func @transform_0(%arg0: i32) -> (i32, i32, i32) {
    %c0_i32 = arith.constant 0 : i32
    %c0_i32_0 = arith.constant 0 : i32
    %c0_i32_1 = arith.constant 0 : i32
    return %arg0, %c0_i32, %c0_i32_0 : i32, i32, i32
  }
  func.func @transform_1(%arg0: i32) -> (i32, i32) {
    %c0_i32 = arith.constant 0 : i32
    %c0_i32_0 = arith.constant 0 : i32
    %c0_i32_1 = arith.constant 0 : i32
    return %c0_i32, %c0_i32_0 : i32, i32
  }
  func.func @transform_2(%arg0: i32) -> (i32, i32) {
    %c0_i32 = arith.constant 0 : i32
    %c0_i32_0 = arith.constant 0 : i32
    %c0_i32_1 = arith.constant 0 : i32
    return %c0_i32, %c0_i32_0 : i32, i32
  }
  func.func @transform_3(%arg0: i32) -> (i32, i32, i32) {
    %c0_i32 = arith.constant 0 : i32
    %c0_i32_0 = arith.constant 0 : i32
    %c0_i32_1 = arith.constant 0 : i32
    %c0_i32_2 = arith.constant 0 : i32
    return %c0_i32, %c0_i32_0, %c0_i32_1 : i32, i32, i32
  }
  func.func @transform_4(%arg0: i32) -> (i32, i32) {
    %c0_i32 = arith.constant 0 : i32
    %c0_i32_0 = arith.constant 0 : i32
    %c0_i32_1 = arith.constant 0 : i32
    return %c0_i32, %c0_i32_0 : i32, i32
  }
  func.func @transform_5(%arg0: i32) -> (i32, i32, i32) {
    %c0_i32 = arith.constant 0 : i32
    %c0_i32_0 = arith.constant 0 : i32
    %c0_i32_1 = arith.constant 0 : i32
    %c0_i32_2 = arith.constant 0 : i32
    return %c0_i32, %c0_i32_0, %c0_i32_1 : i32, i32, i32
  }
  func.func @transform_6(%arg0: i32) -> (i32, i32) {
    %c0_i32 = arith.constant 0 : i32
    %c0_i32_0 = arith.constant 0 : i32
    %c0_i32_1 = arith.constant 0 : i32
    return %c0_i32, %c0_i32_0 : i32, i32
  }
  func.func @transform_7(%arg0: i32) -> (i32, i32, i32) {
    %c0_i32 = arith.constant 0 : i32
    %c0_i32_0 = arith.constant 0 : i32
    %c0_i32_1 = arith.constant 0 : i32
    return %arg0, %c0_i32, %c0_i32_0 : i32, i32, i32
  }
}

</mosaic_0001>

<bundles_post_ra>
// kernel: tpu_custom_call.1
= control target key start
LH: loop header
LB: loop body
LE: loop exit
PB: predicated region body
PF: predicated region fallthrough
CT: control target
= control target key end

     0   :  { %12 = vsyncpa [#allocation5], 0  ;;  %s3616_s0 = inlined_call_operand.hbm [shape: f32[2,32,96], index: 0, kind: input, shape index: {}]   ;;  %s3617_s1 = inlined_call_operand.vmem [shape: f32[1,96], index: 1, kind: input, shape index: {}]   ;;  %s3618_s2 = inlined_call_operand.vmem [shape: f32[1,96], index: 2, kind: input, shape index: {}]   ;;  %s3619_s3 = inlined_call_operand.hbm [shape: bf16[3,102,256], index: 3, kind: input, shape index: {}]   ;;  %s3620_s4 = inlined_call_operand.vmem [shape: f32[1,256], index: 4, kind: input, shape index: {}]   ;;  %s3621_s5 = inlined_call_operand.hbm [shape: bf16[3,272,256], index: 5, kind: input, shape index: {}]   ;;  %s3622_s6 = inlined_call_operand.vmem [shape: f32[1,256], index: 6, kind: input, shape index: {}]   ;;  %s3623_s7 = inlined_call_operand.hbm [shape: bf16[2,32,256], index: 7, kind: output, shape index: {}]  }
   0x1   :  { %14 = vsyncpa [#allocation5 + $0x1], 0 }
   0x2   :  { %15 = vsyncpa [#allocation8], 0 }
   0x3   :  { %16 = vsyncpa [#allocation6], 0 }
   0x4   :  { %18 = vsyncpa [#allocation6 + $0x1], 0  ;;  %s3138_s24 = smov 0   ;;  %s3140_s25 = smov 0  }
   0x5   :  { %s3142_s26 = smov 0   ;;  %s3144_s27 = smov 0  }
   0x6 LB: > { %s3159_s28 = sadd.s32 4294967295, %s3086_s27   ;;  %s2352_s29 = sadd.s32 4294967294, %s3086_s27   ;;  %s3086_s27 = sphi %s3144_s27, %s3653_s27   ;;  %s3082_s26 = sphi %s3142_s26, %s3652_s26   ;;  %s3078_s25 = sphi %s3140_s25, %s3651_s25   ;;  %s3074_s24 = sphi %s3138_s24, %s3650_s24  }
   0x7   : > { %p44_p0 = scmp.ne.s32.totalorder %s3078_s25, %s3074_s24  ;;  %p3624_p1 = scmp.eq.s32.totalorder %s3159_s28, 0 }
   0x8   : > { %p200_p3 = scmp.eq.s32.totalorder %s2352_s29, 1  ;;  %p2353_p5 = scmp.ge.s32.totalorder %s3086_s27, 1 }
   0x9   : > { %p3168_p4 = por %p3624_p1, %p44_p0  ;;  %p207_p7 = scmp.lt.s32.totalorder %s3086_s27, 3 }
   0xa   : > { %p3173_p6 = por %p200_p3, %p44_p0  ;;  %s3088_s10 = smov [#allocation7]  }
   0xb   : > { %s3628_s30 = scalar_select %p3168_p4, 1, 0 }
   0xc   : > { %s3629_s8 = scalar_select %p3173_p6, 1, 0 }
   0xd   : > { %p3178_p8 = pnand %p2353_p5, %p207_p7  ;;  %s225_s11 = sshll.u32 %s3088_s10, 4  ;;  %s3182_s11 = int_to_ptr.vmem [resolvable:$true] %s225_s11 }
   0xe   : > { %s3089_s13 = smov [#allocation9]   ;;  %s2930_s17 = scalar_lea.hbm %s3619_s3, 4992 }
   0xf   : > { %p2643_p9 = pneg %p3178_p8  ;;  %s241_s14 = sshll.u32 %s3089_s13, 4  ;;  %s3193_s14 = int_to_ptr.vmem [resolvable:$true] %s241_s14 }
  0x10   : > { %p2931_p12 = scmp.ne.s32.totalorder %s3619_s3, %s2930_s17  ;;  %p2937_p5 = scmp.lt.u32.totalorder %s2930_s17, %s3619_s3 }
  0x11   : > { %p3189_p11 = pnand %p2643_p9, %p3624_p1 }
  0x13   : > { %p2932_p13 = pneg %p3189_p11 }
  0x15   : > { %p2933_p0 = pnand %p2932_p13, %p2931_p12 }
  0x17   : > { %p2934_p3 = pneg %p2933_p0 }
  0x19   : > { %p2939_p7 = pnand %p2937_p5, %p2934_p3 }
  0x1b   : > { %2942 = shalt.err (!%p2939_p7)
}
  0x1c   : > { %s2943_s22 = scalar_lea.vmem %s3182_s11, 4992  ;;  %p2951_p2 = scmp.lt.s32.totalorder %s3182_s11, %s3182_s11 }
  0x1d   : > { %p2944_p9 = scmp.ne.s32.totalorder %s3182_s11, %s2943_s22  ;;  %p2952_p12 = scmp.lt.s32.totalorder %s2943_s22, %s2943_s22 }
  0x1f   : > { %p2946_p10 = pnand %p2944_p9, %p2932_p13  ;;  %p2953_p0 = por %p2952_p12, %p2951_p2 }
  0x21   : > { %p2947_p1 = pneg %p2946_p10 }
  0x23   : > { %p2954_p6 = pnand %p2953_p0, %p2947_p1 }
  0x25   : > { %2957 = shalt.err (!%p2954_p6)
}
  0x26   : > { %s3625_s23 = smov 128   ;;  %s3091_s29 = smov 8  }
  0x27   : > { %2646 = dma.hbm_to_vmem [thread:$0]  (!%p3189_p11), %s3619_s3, 4992, %s3182_s11, [#allocation8], %s3625_s23, %s3625_s23, %s3091_s29  }
  0x28   : > { %s2958_s17 = scalar_lea.hbm %s3621_s5, 13056 }
  0x29   : > { %p2959_p1 = scmp.ne.s32.totalorder %s3621_s5, %s2958_s17  ;;  %p2965_p10 = scmp.lt.u32.totalorder %s2958_s17, %s3621_s5 }
  0x2b   : > { %p2961_p2 = pnand %p2959_p1, %p2932_p13 }
  0x2d   : > { %p2962_p6 = pneg %p2961_p2 }
  0x2f   : > { %p2967_p3 = pnand %p2965_p10, %p2962_p6 }
  0x31   : > { %2970 = shalt.err (!%p2967_p3)
}
  0x32   : > { %s2971_s11 = scalar_lea.vmem %s3193_s14, 13056  ;;  %p2979_p12 = scmp.lt.s32.totalorder %s3193_s14, %s3193_s14 }
  0x33   : > { %p2972_p5 = scmp.ne.s32.totalorder %s3193_s14, %s2971_s11  ;;  %p2980_p0 = scmp.lt.s32.totalorder %s2971_s11, %s2971_s11 }
  0x35   : > { %p2974_p7 = pnand %p2972_p5, %p2932_p13  ;;  %p2981_p1 = por %p2980_p0, %p2979_p12 }
  0x37   : > { %p2975_p9 = pneg %p2974_p7 }
  0x39   : > { %p2982_p2 = pnand %p2981_p1, %p2975_p9 }
  0x3b   : > { %2985 = shalt.err (!%p2982_p2)
}
  0x3c   : > { %2649 = dma.hbm_to_vmem [thread:$0]  (!%p3189_p11), %s3621_s5, 13056, %s3193_s14, [#allocation8], %s3625_s23, %s3625_s23, %s3091_s29  }
  0x3d   : > { %s3254_s12 = sadd.s32 1, %s3086_s27   ;;  %s31_s13 = sadd.s32 1, %s3082_s26 }
  0x3e   : > { %s28_s15 = ssub.s32 %s3086_s27, %s3254_s12  ;;  %p38_p13 = scmp.ne.s32.totalorder %s3082_s26, %s3078_s25 }
  0x3f   : > { %p29_p6 = scmp.eq.s32.totalorder %s28_s15, 0  ;;  %p39_p10 = scmp.eq.s32.totalorder %s3086_s27, 0 }
  0x40   : > { %p3632_p3 = scmp.eq.s32.totalorder %s3159_s28, 1  ;;  %p2660_p7 = scmp.lt.s32.totalorder %s3086_s27, 2 }
  0x41   : > { %s3270_s17 = scalar_select %p29_p6, %s3082_s26, %s31_s13  }
  0x42   : > { %p3264_p5 = por %p3632_p3, %p38_p13  ;;  %p40_p9 = por %p39_p10, %p38_p13 }
  0x43   : > { %s258_s18 = sand.u32 1, %s3082_s26   ;;  %s2559_s14 = sshll.u32 %s3086_s27, 9 }
  0x44   : > { %s3633_s16 = scalar_select %p3264_p5, 1, 0 }
  0x45   : > { %s2357_s19 = sshll.u32 %s258_s18, 5  ;;  %s3277_s11 = scalar_lea.hbm %s3616_s0, %s2559_s14 }
  0x46   : > { %s262_s22 = scalar_lea.vmem [#allocation4], %s2357_s19  ;;  %p3281_p11 = pnand %p2660_p7, %p40_p9 }
  0x47   : > { %s269_s10 = sshll.u32 %s262_s22, 4  ;;  %s3285_s15 = scalar_lea.sflag [#allocation5], %s258_s18  ;;  %s3279_s10 = int_to_ptr.vmem [resolvable:$true] %s269_s10 }
  0x48   : > { %s2986_s23 = scalar_lea.hbm %s3277_s11, 512  ;;  %p2988_p0 = pneg %p3281_p11 }
  0x49   : > { %p2987_p12 = scmp.ne.s32.totalorder %s3277_s11, %s2986_s23  ;;  %s2991_s20 = scalar_lea.hbm %s3616_s0, 1024 }
  0x4a   : > { %p2992_p13 = scmp.lt.u32.totalorder %s3277_s11, %s3616_s0  ;;  %p2993_p6 = scmp.lt.u32.totalorder %s2991_s20, %s2986_s23 }
  0x4b   : > { %p2989_p1 = pnand %p2988_p0, %p2987_p12  ;;  %p2995_p3 = scmp.lt.u32.totalorder %s2986_s23, %s3277_s11 }
  0x4c   : > { %p2994_p10 = por %p2993_p6, %p2992_p13 }
  0x4d   : > { %p2990_p2 = pneg %p2989_p1 }
  0x4e   : > { %p2996_p7 = por %p2995_p3, %p2994_p10 }
  0x50   : > { %p2997_p9 = pnand %p2996_p7, %p2990_p2 }
  0x52   : > { %3000 = shalt.err (!%p2997_p9)
}
  0x53   : > { %s3001_s18 = scalar_lea.vmem %s3279_s10, 512  ;;  %s3092_s19 = smov [#allocation4]  }
  0x54   : > { %p3002_p12 = scmp.ne.s32.totalorder %s3279_s10, %s3001_s18  ;;  %s3006_s14 = sshll.u32 %s3092_s19, 4  ;;  %s3007_s14 = int_to_ptr.vmem [resolvable:$false] %s3006_s14 }
  0x55   : > { %s3008_s21 = scalar_lea.vmem %s3007_s14, 1024  ;;  %p3009_p4 = scmp.lt.s32.totalorder %s3279_s10, %s3007_s14 }
  0x56   : > { %p3004_p1 = pnand %p3002_p12, %p2988_p0  ;;  %p3010_p13 = scmp.lt.s32.totalorder %s3008_s21, %s3001_s18 }
  0x58   : > { %p3005_p5 = pneg %p3004_p1  ;;  %p3011_p6 = por %p3010_p13, %p3009_p4 }
  0x5a   : > { %p3012_p10 = pnand %p3011_p6, %p3005_p5 }
  0x5c   : > { %3015 = shalt.err (!%p3012_p10)
}
  0x5d   : > { %s3635_s23 = smov 128   ;;  %281 = sbr.rel (%p3178_p8) target bundleno = 1078 (0x436), region = 48 }
  0x5e   : > { %2653 = dma.hbm_to_vmem [thread:$0]  (!%p3281_p11), %s3277_s11, 512, %s3279_s10, %s3285_s15, %s3635_s23, %s3635_s23, %s3091_s29  }
  0x5f   : > { %s3319_s20 = sand.u32 (!%p3178_p8), 1, %s3078_s25   ;;  %p3636_p4 = scmp.ne.s32.totalorder (!%p3178_p8), %s3628_s30, 0 }
  0x60   : > { %s2361_s22 = sshll.u32 (!%p3178_p8), %s3319_s20, 5  ;;  %s284_s18 = scalar_lea.sflag (!%p3178_p8), [#allocation5], %s3319_s20 }
  0x61   : > { %s287_s13 = scalar_lea.vmem (!%p3178_p8), [#allocation4], %s2361_s22 }
  0x64   : > { %3061 = dma.done.wait (%p3636_p4), %s284_s18, 512  }
  0x65   : > { %3063 = vsyncadd (%p3636_p4), %s284_s18, 4294966784  ;;  %p3637_p5 = scmp.eq.s32.totalorder %s3159_s28, 0 }
  0x67   : > { %3065 = dma.done.wait (%p3637_p5), [#allocation8], 18048   ;;  %p3638_p8 = pmov %p3637_p5 }
  0x68   : > { %vm327_vm0 = vcmask 830464   ;;  %v3093_v0 = vmov 0   ;;  %v334_v1 = vld [vmem:[%s287_s13] sm:$0xff]  ;;  %v2365_v2 = vld [vmem:[%s3617_s1] ss:$0 sm:$0xff]  ;;  %vm332_vm1 = vcmask 827392  }
  0x69   : > { %3067 = vsyncadd (%p3638_p8), [#allocation8], 4294949248  ;;  %328 = vst.msk [vmem:[#allocation2] sm:$0xf] %vm327_vm0, %v3093_v0  ;;  %617 = vmatprep.mubr.bf16.mxu0 %v3093_v0  ;;  %1531 = vmatprep.mubr.bf16.mxu1 %v3093_v0  ;;  %v2366_v3 = vld [vmem:[%s3618_s2] ss:$0 sm:$0xff]  ;;  %v345_v4 = vmul.f32 %v2365_v2, %v334_v1 }
  0x6a   : > { %329 = vst.msk [vmem:[#allocation2 + $0x4] sm:$0xf] %vm327_vm0, %v3093_v0  ;;  %330 = vst.msk [vmem:[#allocation2 + $0x8] sm:$0xf] %vm327_vm0, %v3093_v0  ;;  %v335_v5 = vld [vmem:[%s287_s13 + $0x8] sm:$0xff]  ;;  %v336_v6 = vld [vmem:[%s287_s13 + $0x10] sm:$0xff] }
  0x6b   : > { %331 = vst.msk [vmem:[#allocation2 + $0xc] sm:$0xf] %vm327_vm0, %v3093_v0  ;;  %959 = vst [vmem:[#allocation3 + $0xc] sm:$0xff] %v3093_v0  ;;  %v337_v7 = vld [vmem:[%s287_s13 + $0x18] sm:$0xff]  ;;  %v346_v8 = vmul.f32 %v2365_v2, %v335_v5  ;;  %v347_v9 = vmul.f32 %v2365_v2, %v336_v6  ;;  %v2704_v11 = vld [vmem:[#allocation7 + $0x6c] ss:$8 sps:$4 sm:$0xff]   ;;  %v356_v12 = vadd.f32 %v2366_v3, %v345_v4 }
  0x6c   : > { %961 = vst [vmem:[#allocation3 + $0x18] sm:$0xff] %v3093_v0  ;;  %963 = vst [vmem:[#allocation3 + $0x24] sm:$0xff] %v3093_v0  ;;  %v348_v10 = vmul.f32 %v2365_v2, %v337_v7  ;;  %v2706_v13 = vld [vmem:[#allocation7 + $0x68] ss:$8 sps:$4 sm:$0xff]   ;;  %585 = vmatprep.subr.bf16.mxu0 %v2704_v11  ;;  %v2707_v17 = vld [vmem:[#allocation7 + $0x7c] ss:$8 sps:$4 sm:$0xff]  }
  0x6d   : > { %965 = vst [vmem:[#allocation3 + $0x30] sm:$0x11] %v3093_v0  ;;  %333 = vst.msk [vmem:[#allocation2 + $0x10] sm:$0x1] %vm332_vm1, %v3093_v0  ;;  %v357_v14 = vadd.f32 %v2366_v3, %v346_v8  ;;  %v358_v15 = vadd.f32 %v2366_v3, %v347_v9  ;;  %v2560_v18 = vpack.c.bf16 %v356_v12, %v356_v12  ;;  %vm372_vm2 = vsmask.f32 256  ;;  %586 = vmatpush1.bf16.msra.mxu0 %v2706_v13 }
  0x6e   : > { %v359_v16 = vadd.f32 %v2366_v3, %v348_v10  ;;  %v2709_v19 = vld [vmem:[#allocation7 + $0x78] ss:$8 sps:$4 sm:$0xff]   ;;  %vm373_vm3 = vsmask.f32 4368  ;;  %587 = vmatprep.subr.bf16.mxu0 %v2707_v17  ;;  %v463_v23 = vld [vmem:[#allocation7 + $0x88] sm:$0xff]  ;;  %v464_v24 = vld [vmem:[#allocation7 + $0x90] sm:$0xff] }
  0x6f   : > { %v2561_v20 = vpack.c.bf16 %v357_v14, %v357_v14  ;;  %v2562_v21 = vpack.c.bf16 %v358_v15, %v358_v15  ;;  %v2710_v25 = vld [vmem:[#allocation7 + $0x8c] ss:$8 sps:$4 sm:$0xff]   ;;  %v376_v26 = vshrl.u32 %v2560_v18, 16  ;;  %v379_v27 = vshll.u32 %v2560_v18, 16  ;;  %v465_v38 = vld [vmem:[#allocation7 + $0x98] sm:$0xff]  ;;  %v466_v39 = vld [vmem:[#allocation7 + $0xa0] sm:$0xff] }
  0x70   : > { %v2563_v22 = vpack.c.bf16 %v359_v16, %v359_v16  ;;  %v2378_v35 = vcombine.low %v463_v23, %v464_v24  ;;  %v2712_v40 = vld [vmem:[#allocation7 + $0x9c] ss:$8 sps:$4 sm:$0xff]   ;;  %vm3352_vm4 = vmor %vm372_vm2, %vm373_vm3  ;;  %s3094_s10 = smov 3   ;;  %v2380_v50 = vcombine.low %v465_v38, %v466_v39  ;;  %v2714_v51 = vld [vmem:[#allocation7 + $0xac] ss:$8 sps:$4 sm:$0xff]   ;;  %vm578_vm5 = vcmask 1042432  }
  0x71   : > { %v384_v28 = vshrl.u32 %v2561_v20, 16  ;;  %v393_v29 = vshrl.u32 %v2562_v21, 16  ;;  %v396_v30 = vshll.u32 %v2562_v21, 16  ;;  %v387_v31 = vshll.u32 %v2561_v20, 16  ;;  %588 = vmatpush1.bf16.msra.mxu0 %v2709_v19  ;;  %v2716_v54 = vld [vmem:[#allocation7 + $0xa8] ss:$8 sps:$4 sm:$0xff]  }
  0x72   : > { %v378_v32 = vrot.slane %v376_v26, 7  ;;  %v402_v33 = vshrl.u32 %v2563_v22, 16  ;;  %v405_v34 = vshll.u32 %v2563_v22, 16  ;;  %589 = vmatprep.subr.bf16.mxu0 %v2710_v25  ;;  %v2717_v56 = vld [vmem:[#allocation7 + $0xbc] ss:$8 sps:$4 sm:$0xff]   ;;  %vm425_vm6 = vcmask 805912  }
  0x73   : > { %v386_v36 = vrot.slane %v384_v28, 7  ;;  %v395_v37 = vrot.slane %v393_v29, 7  ;;  %v471_v58 = vld [vmem:[#allocation7 + $0xc8] sm:$0x77]  ;;  %v2719_v59 = vld [vmem:[#allocation7 + $0xb8] ss:$8 sps:$4 sm:$0xff]  }
  0x74   : > { %v381_v41 = vor.u32 %v379_v27, %v378_v32  ;;  %v382_v42 = vrot.slane %v378_v32, 4  ;;  %v404_v44 = vrot.slane %v402_v33, 7  ;;  %v2387_v60 = vcombine.high %v471_v58, %v471_v58  ;;  %v2724_v63 = vld [vmem:[#allocation7 + $0x4] ss:$8 sps:$4 sm:$0xff]   ;;  %v428_v1 = vld [vmem:[#allocation2] sm:$0xf] }
  0x75   : > { %v391_v45 = vrot.slane %v386_v36, 4  ;;  %v398_v46 = vor.u32 %v396_v30, %v395_v37  ;;  %v389_v47 = vor.u32 %v387_v31, %v386_v36  ;;  %v400_v48 = vrot.slane %v395_v37, 4  ;;  %590 = vmatpush1.bf16.msra.mxu0 %v2378_v35  ;;  %v437_v7 = vld [vmem:[#allocation2 + $0x10] sm:$0x1]  ;;  %v2729_v22 = vld [vmem:[#allocation7 + $0x14] ss:$8 sps:$4 sm:$0xff]  }
  0x76   : > { %410 = vrot.lane.b32.xlu0 %v381_v41, %s3094_s10  ;;  %v407_v49 = vor.u32 %v405_v34, %v404_v44  ;;  %591 = vmatprep.subr.bf16.mxu0 %v2712_v40  ;;  %v409_v57 = vrot.slane %v404_v44, 4  ;;  %v2386_v61 = vcombine.low %v471_v58, %v471_v58  ;;  %vm426_vm7 = vsmask.f32 7938  ;;  %v2722_v19 = vld [vmem:[#allocation7] ss:$8 sps:$4 sm:$0xff]   ;;  %s3095_s14 = smov 8  }
  0x77   : > { %v399_v52 = vsel %vm3352_vm4, %v391_v45, %v398_v46  ;;  %v390_v53 = vsel %vm3352_vm4, %v382_v42, %v389_v47  ;;  %vm427_vm8 = vmand %vm425_vm6, %vm426_vm7  ;;  %vm435_vm9 = vcmask 802840   ;;  %vm485_vm11 = vsmask.f32 7424  ;;  %v2727_v25 = vld [vmem:[#allocation7 + $0x10] ss:$8 sps:$4 sm:$0xff]   ;;  %s325_s18 = scalar_lea.vmem [#allocation10], %s2361_s22 }
  0x78   : > { %414 = vrot.lane.b32.xlu1 %v399_v52, %s3094_s10  ;;  %v408_v55 = vsel %vm3352_vm4, %v400_v48, %v407_v49  ;;  %v580_v62 = vsel %vm578_vm5, %v2386_v61, 0  ;;  %vm436_vm10 = vmand %vm435_vm9, %vm372_vm2  ;;  %vm571_vm12 = vcmask 834560   ;;  %v2732_v26 = vld [vmem:[#allocation7 + $0x24] ss:$8 sps:$4 sm:$0xff]   ;;  %v2730_v29 = vld [vmem:[#allocation7 + $0x20] ss:$8 sps:$4 sm:$0xff]  }
  0x79   : > { %592 = vmatpush1.bf16.msra.mxu0 %v2380_v50  ;;  %v2736_v31 = vld [vmem:[#allocation7 + $0x34] ss:$8 sps:$4 sm:$0xff]   ;;  %v2734_v33 = vld [vmem:[#allocation7 + $0x30] ss:$8 sps:$4 sm:$0xff]   ;;  %v2739_v34 = vld [vmem:[#allocation7 + $0x44] ss:$8 sps:$4 sm:$0xff]  }
  0x7a   : > { %412 = vrot.lane.b32.xlu0 %v390_v53, %s3094_s10  ;;  %593 = vmatprep.subr.bf16.mxu0 %v2714_v51  ;;  %v2737_v35 = vld [vmem:[#allocation7 + $0x40] ss:$8 sps:$4 sm:$0xff]   ;;  %v2742_v36 = vld [vmem:[#allocation7 + $0x54] ss:$8 sps:$4 sm:$0xff]   ;;  %v2740_v38 = vld [vmem:[#allocation7 + $0x50] ss:$8 sps:$4 sm:$0xff]  }
  0x7b   : > { %v456_v37 = vld [vmem:[#allocation7 + $0x60] sm:$0x77]  ;;  %v2747_v42 = vld [vmem:[#allocation7 + $0xd4] ss:$8 sps:$4 sm:$0xff]   ;;  %v2745_v44 = vld [vmem:[#allocation7 + $0xd0] ss:$8 sps:$4 sm:$0xff]  }
  0x7c   : > { %416 = vrot.lane.b32.xlu1 %v408_v55, %s3094_s10  ;;  %v2404_v39 = vcombine.high %v456_v37, %v456_v37  ;;  %v2403_v40 = vcombine.low %v456_v37, %v456_v37  ;;  %v2750_v45 = vld [vmem:[#allocation7 + $0xe4] ss:$8 sps:$4 sm:$0xff]   ;;  %v2748_v46 = vld [vmem:[#allocation7 + $0xe0] ss:$8 sps:$4 sm:$0xff]   ;;  %v2753_v47 = vld [vmem:[#allocation7 + $0xf4] ss:$8 sps:$4 sm:$0xff]  }
  0x7d   : > { %594 = vmatpush1.bf16.msra.mxu0 %v2716_v54  ;;  %v2751_v48 = vld [vmem:[#allocation7 + $0xf0] ss:$8 sps:$4 sm:$0xff]   ;;  %v2756_v49 = vld [vmem:[#allocation7 + $0x104] ss:$8 sps:$4 sm:$0xff]   ;;  %v2754_v50 = vld [vmem:[#allocation7 + $0x100] ss:$8 sps:$4 sm:$0xff]  }
  0x7e   : > { %418 = vrot.lane.b32.xlu0 %v409_v57, %s3094_s10  ;;  %595 = vmatprep.subr.bf16.mxu0 %v2717_v56  ;;  %v708_v41 = vsel %vm578_vm5, %v2403_v40, 0  ;;  %v2759_v51 = vld [vmem:[#allocation7 + $0x114] ss:$8 sps:$4 sm:$0xff]   ;;  %v2757_v52 = vld [vmem:[#allocation7 + $0x110] ss:$8 sps:$4 sm:$0xff]   ;;  %vm784_vm13 = vcmask 1046528  }
  0x7f   : > { %v2762_v53 = vld [vmem:[#allocation7 + $0x124] ss:$8 sps:$4 sm:$0xff]   ;;  %v780_v54 = vld [vmem:[#allocation7 + $0x130] sm:$0x77]  ;;  %v2760_v55 = vld [vmem:[#allocation7 + $0x120] ss:$8 sps:$4 sm:$0xff]  }
  0x80   : > { %v2422_v56 = vcombine.high %v780_v54, %v780_v54  ;;  %v2421_v57 = vcombine.low %v780_v54, %v780_v54  ;;  %vm957_vm14 = vcmask 125952   ;;  %vm966_vm15 = vcmask 122880   ;;  %s2260_s13 = sshll.u32 %s325_s18, 4  ;;  %s2572_s22 = sshll.u32 %s3159_s28, 9  ;;  %s3566_s13 = int_to_ptr.vmem [resolvable:$true] %s2260_s13 }
  0x81   : > { %596 = vmatpush1.bf16.msra.mxu0 %v2719_v59  ;;  %958 = vst.msk [vmem:[#allocation3 + $0x8] sm:$0xf] %vm957_vm14, %v3093_v0  ;;  %960 = vst.msk [vmem:[#allocation3 + $0x14] sm:$0xf] %vm957_vm14, %v3093_v0  ;;  %vm1054_vm0 = vcmask 1043520   ;;  %vm1056_vm1 = vcmask 1047556   ;;  %s3571_s29 = scalar_lea.hbm %s3623_s7, %s2572_s22 }
  0x82   : > { %2388 = vmatprep.subr.msk.bf16.mxu0 %vm578_vm5, %v2387_v60  ;;  %v862_v60 = vsel %vm578_vm5, %v2421_v57, 0  ;;  %962 = vst.msk [vmem:[#allocation3 + $0x20] sm:$0xf] %vm957_vm14, %v3093_v0  ;;  %964 = vst.msk [vmem:[#allocation3 + $0x2c] sm:$0xf] %vm957_vm14, %v3093_v0  ;;  %vm1080_vm14 = vcmask 1044484  }
  0x83   : > { %967 = vst.msk [vmem:[#allocation3 + $0x38] sm:$0x1] %vm966_vm15, %v3093_v0  ;;  %v2799_v57 = vld [vmem:[#allocation9 + $0x1c0] ss:$8 sps:$4 sm:$0xff]   ;;  %vm1057_vm3 = vsmask.f32 7954 }
  0x84   : > { %vm1081_vm15 = vsmask.f32 4352  ;;  %s2247_s11 = scalar_lea.sflag [#allocation6], %s3319_s20  ;;  %s3016_s10 = scalar_lea.vmem %s3566_s13, 512 }
  0x85   : > { %598 = vmatpush1.bf16.msra.mxu0 %v580_v62  ;;  %p3017_p11 = scmp.ne.s32.totalorder %s3566_s13, %s3016_s10  ;;  %p3647_p0 = scmp.ne.s32.totalorder %s3633_s16, 0 }
  0x86   : > { %713 = vmatprep.subr.bf16.mxu0 %v2724_v63  ;;  %s3096_s28 = smov [#allocation10]  }
  0x87   : > { %p3018_p2 = pnand %p3017_p11, %p3647_p0  ;;  %s3020_s15 = sshll.u32 %s3096_s28, 4  ;;  %s3021_s15 = int_to_ptr.vmem [resolvable:$false] %s3020_s15 }
  0x88   : > { %v1065_v43 = vld [vmem:[#allocation3 + $0x8] sm:$0xf]  ;;  %s3022_s19 = scalar_lea.vmem %s3021_s15, 1024  ;;  %p3023_p7 = scmp.lt.s32.totalorder %s3566_s13, %s3021_s15 }
  0x89   : > { %p3019_p3 = pneg %p3018_p2  ;;  %p3024_p9 = scmp.lt.s32.totalorder %s3022_s19, %s3016_s10 }
  0x8b   : > { %p3025_p12 = por %p3024_p9, %p3023_p7 }
  0x8d   : > { %p3026_p1 = pnand %p3025_p12, %p3019_p3 }
  0xe8   : > { %v411_v2 = vpop.permute.xlu0 %410 }
  0xe9   : > { %v429_v3 = vsel %vm427_vm8, %v411_v2, %v428_v1  ;;  %vm1038_vm8 = vcmask 64512  }
  0xea   : > { %430 = vst [vmem:[#allocation2] sm:$0xf] %v429_v3  ;;  %v415_v4 = vpop.permute.xlu1 %414  ;;  %v2766_v3 = vld [vmem:[#allocation9 + $0x110] ss:$8 sps:$4 sm:$0xff]  }
  0xeb   : > { %433 = vst.msk [vmem:[#allocation2 + $0x8] sm:$0xf] %vm425_vm6, %v415_v4  ;;  %v2768_v4 = vld [vmem:[#allocation9 + $0x114] ss:$8 sps:$4 sm:$0xff]  }
  0xec   : > { %v413_v5 = vpop.permute.xlu0 %412 }
  0xed   : > { %432 = vst.msk [vmem:[#allocation2 + $0x4] sm:$0xf] %vm425_vm6, %v413_v5  ;;  %v2771_v5 = vld [vmem:[#allocation9 + $0x124] ss:$8 sps:$4 sm:$0xff]  }
  0xee   : > { %v417_v6 = vpop.permute.xlu1 %416 }
  0xef   : > { %434 = vst.msk [vmem:[#allocation2 + $0xc] sm:$0xf] %vm425_vm6, %v417_v6  ;;  %v2769_v6 = vld [vmem:[#allocation9 + $0x120] ss:$8 sps:$4 sm:$0xff]   ;;  %vm1058_vm6 = vmand %vm1056_vm1, %vm1057_vm3 }
  0xf0   : > { %v419_v8 = vpop.permute.xlu0 %418  ;;  %vm3448_vm3 = vmand %vm1080_vm14, %vm1081_vm15 }
  0xf1   : > { %v438_v9 = vsel %vm436_vm10, %v419_v8, %v437_v7  ;;  %v440_v10 = vld [vmem:[#allocation2] sm:$0xf]  ;;  %v2774_v7 = vld [vmem:[#allocation9 + $0x134] ss:$8 sps:$4 sm:$0xff]  }
  0xf2   : > { %439 = vst [vmem:[#allocation2 + $0x10] sm:$0x1] %v438_v9  ;;  %v766_v58 = vld [vmem:[#allocation2] sm:$0xe]  ;;  %v2777_v9 = vld [vmem:[#allocation9 + $0x144] ss:$8 sps:$4 sm:$0xff]  }
  0xf3   : > { %v2772_v8 = vld [vmem:[#allocation9 + $0x130] ss:$8 sps:$4 sm:$0xff]  }
  0xf4   : > { %v3366_v11 = vld [vmem:[#allocation2 + $0x4] sm:$0xf] }
  0xf5   : > { %v2371_v12 = vcombine.low %v440_v10, %v3366_v11  ;;  %v2408_v59 = vcombine.low %v766_v58, %v3366_v11  ;;  %v2775_v10 = vld [vmem:[#allocation9 + $0x140] ss:$8 sps:$4 sm:$0xff]   ;;  %v2780_v11 = vld [vmem:[#allocation9 + $0x154] ss:$8 sps:$4 sm:$0xff]  }
  0xf6   : > { %v3369_v13 = vld [vmem:[#allocation2 + $0x8] sm:$0xff]  }
  0xf7   : > { %v489_v14 = vshll.u32 %v2371_v12, 16  ;;  %v487_v15 = vshrl.u32 %v2371_v12, 16  ;;  %v494_v16 = vshll.u32 %v3369_v13, 16  ;;  %v498_v27 = vshrl.u32 %v3369_v13, 16 }
  0xf8   : > { %v785_v61 = vrot.slane %v2408_v59, 1  ;;  %v786_v62 = vrot.slane %v3369_v13, 1 }
  0xf9   : > { %v491_v17 = vrot.slane %v489_v14, 1  ;;  %v3372_v18 = vld [vmem:[#allocation2 + $0x10] ss:$0 sps:$4 sm:$0x11]   ;;  %v496_v21 = vrot.slane %v494_v16, 1 }
  0xfa   : > { %v502_v24 = vshll.u32 %v3372_v18, 16  ;;  %v787_v63 = vsel %vm784_vm13, %v785_v61, %v786_v62  ;;  %v788_v1 = vrot.slane %v3372_v18, 1  ;;  %v2781_v14 = vld [vmem:[#allocation9 + $0x160] ss:$8 sps:$4 sm:$0xff]   ;;  %v2784_v16 = vld [vmem:[#allocation9 + $0x170] ss:$8 sps:$4 sm:$0xff]  }
  0xfb   : > { %v492_v20 = vor.u32 %v491_v17, %v487_v15  ;;  %v500_v30 = vor.u32 %v498_v27, %v496_v21  ;;  %v2786_v15 = vld [vmem:[#allocation9 + $0x174] ss:$8 sps:$4 sm:$0xff]   ;;  %v2789_v17 = vld [vmem:[#allocation9 + $0x184] ss:$8 sps:$4 sm:$0xff]   ;;  %v2787_v18 = vld [vmem:[#allocation9 + $0x180] ss:$8 sps:$4 sm:$0xff]  }
  0xfc   : > { %v504_v28 = vrot.slane %v502_v24, 1  ;;  %v789_v2 = vsel %vm784_vm13, %v786_v62, %v788_v1  ;;  %v928_v24 = vld [vmem:[%s3620_s4] sm:$0x3] }
  0xfd   : > { %v497_v23 = vsel %vm485_vm11, %v492_v20, %v496_v21  ;;  %v2790_v20 = vld [vmem:[#allocation9 + $0x190] ss:$8 sps:$4 sm:$0xff]   ;;  %v930_v21 = vlaneseq }
  0xfe   : > { %2389 = vmatmul.mubr.msk.bf16.vlgmr.msra.gmra.mrb[0].mxu0 %vm571_vm12, %v497_v23  ;;  %v505_v32 = vsel %vm485_vm11, %v500_v30, %v504_v28 }
  0xff   : > { %714 = vmatpush1.bf16.msra.mxu0 %v2722_v19  ;;  %627 = vmatprep.mubr.bf16.mxu0 %v3093_v0  ;;  %v2792_v19 = vld [vmem:[#allocation9 + $0x194] ss:$8 sps:$4 sm:$0xff]  }
 0x100   : > { %715 = vmatprep.subr.bf16.mxu0 %v2729_v22  ;;  %v3403_v22 = vshrl.u32 %v930_v21, 7 }
 0x102   : > { %v932_v23 = vsub.s32 0, %v3403_v22 }
 0x103   : > { %716 = vmatpush1.bf16.msra.mxu0 %v2727_v25  ;;  %v936_v25 = vsub.s32 1, %v3403_v22 }
 0x104   : > { %717 = vmatprep.subr.bf16.mxu0 %v2732_v26  ;;  %v933_v26 = vrot.slane %v928_v24, %v932_v23 }
 0x105   : > { %v937_v27 = vrot.slane %v928_v24, %v936_v25 }
 0x106   : > { %2390 = vmatmul.mubr.msk.bf16.gmra.mrb[4].mxu0 %vm571_vm12, %v505_v32 }
 0x107   : > { %718 = vmatpush1.bf16.msra.mxu0 %v2730_v29  ;;  %745 = vmatprep.mubr.bf16.mxu0 %v3093_v0 }
 0x108   : > { %719 = vmatprep.subr.bf16.mxu0 %v2736_v31  ;;  %v2795_v31 = vld [vmem:[#allocation9 + $0x1a4] ss:$8 sps:$4 sm:$0xff]  }
 0x10b   : > { %720 = vmatpush1.bf16.msra.mxu0 %v2734_v33 }
 0x10c   : > { %721 = vmatprep.subr.bf16.mxu0 %v2739_v34  ;;  %v2793_v34 = vld [vmem:[#allocation9 + $0x1a0] ss:$8 sps:$4 sm:$0xff]  }
 0x10f   : > { %722 = vmatpush1.bf16.msra.mxu0 %v2737_v35 }
 0x110   : > { %723 = vmatprep.subr.bf16.mxu0 %v2742_v36 }
 0x113   : > { %724 = vmatpush1.bf16.msra.mxu0 %v2740_v38 }
 0x114   : > { %2405 = vmatprep.subr.msk.bf16.mxu0 %vm578_vm5, %v2404_v39 }
 0x117   : > { %726 = vmatpush1.bf16.msra.mxu0 %v708_v41  ;;  %v2798_v41 = vld [vmem:[#allocation9 + $0x1b4] ss:$8 sps:$4 sm:$0xff]  }
 0x118   : > { %867 = vmatprep.subr.bf16.mxu0 %v2747_v42 }
 0x11a   : > { %2406 = vmatmul.mubr.msk.bf16.vlgmr.msra.gmra.mrb[0].mxu0 %vm571_vm12, %v2371_v12  ;;  %v2778_v12 = vld [vmem:[#allocation9 + $0x150] ss:$8 sps:$4 sm:$0xff]  }
 0x11b   : > { %868 = vmatpush1.bf16.msra.mxu0 %v2745_v44  ;;  %755 = vmatprep.mubr.bf16.mxu0 %v3093_v0 }
 0x11c   : > { %869 = vmatprep.subr.bf16.mxu0 %v2750_v45  ;;  %v2796_v45 = vld [vmem:[#allocation9 + $0x1b0] ss:$8 sps:$4 sm:$0xff]  }
 0x11f   : > { %870 = vmatpush1.bf16.msra.mxu0 %v2748_v46 }
 0x120   : > { %871 = vmatprep.subr.bf16.mxu0 %v2753_v47 }
 0x122   : > { %2407 = vmatmul.mubr.msk.bf16.gmra.mrb[4].mxu0 %vm571_vm12, %v3369_v13  ;;  %v2783_v13 = vld [vmem:[#allocation9 + $0x164] ss:$8 sps:$4 sm:$0xff]  }
 0x123   : > { %872 = vmatpush1.bf16.msra.mxu0 %v2751_v48  ;;  %899 = vmatprep.mubr.bf16.mxu0 %v3093_v0 }
 0x124   : > { %873 = vmatprep.subr.bf16.mxu0 %v2756_v49 }
 0x127   : > { %874 = vmatpush1.bf16.msra.mxu0 %v2754_v50 }
 0x128   : > { %875 = vmatprep.subr.bf16.mxu0 %v2759_v51  ;;  %v2801_v51 = vld [vmem:[#allocation9 + $0x1c4] ss:$8 sps:$4 sm:$0xff]  }
 0x12b   : > { %876 = vmatpush1.bf16.msra.mxu0 %v2757_v52 }
 0x12c   : > { %877 = vmatprep.subr.bf16.mxu0 %v2762_v53 }
 0x12f   : > { %878 = vmatpush1.bf16.msra.mxu0 %v2760_v55 }
 0x130   : > { %2423 = vmatprep.subr.msk.bf16.mxu0 %vm578_vm5, %v2422_v56  ;;  %vm1063_vm5 = vcmask 60416  }
 0x131   : > { %vm1064_vm9 = vmand %vm1063_vm5, %vm426_vm7 }
 0x133   : > { %880 = vmatpush1.bf16.msra.mxu0 %v862_v60 }
 0x134   : > { %1446 = vmatprep.subr.bf16.mxu0 %v2768_v4  ;;  %v2804_v4 = vld [vmem:[#allocation9 + $0x1d4] ss:$8 sps:$4 sm:$0xff]  }
 0x136   : > { %2424 = vmatmul.mubr.msk.bf16.vlgmr.msra.gmra.mrb[0].mxu0 %vm571_vm12, %v787_v63 }
 0x137   : > { %909 = vmatprep.mubr.bf16.mxu0 %v3093_v0  ;;  %1447 = vmatpush1.bf16.msra.mxu0 %v2766_v3 }
 0x138   : > { %1448 = vmatprep.subr.bf16.mxu0 %v2771_v5 }
 0x13b   : > { %1449 = vmatpush1.bf16.msra.mxu0 %v2769_v6 }
 0x13c   : > { %1450 = vmatprep.subr.bf16.mxu0 %v2774_v7 }
 0x13e   : > { %2425 = vmatmul.mubr.msk.bf16.gmra.mrb[4].mxu0 %vm571_vm12, %v789_v2  ;;  %vm3435_vm12 = vmor %vm1056_vm1, %vm1054_vm0  ;;  %vm1087_vm1 = vcmask 57344  }
 0x13f   : > { %1451 = vmatpush1.bf16.msra.mxu0 %v2772_v8 }
 0x140   : > { %1452 = vmatprep.subr.bf16.mxu0 %v2777_v9  ;;  %v2802_v9 = vld [vmem:[#allocation9 + $0x1d0] ss:$8 sps:$4 sm:$0xff]  }
 0x143   : > { %1453 = vmatpush1.bf16.msra.mxu0 %v2775_v10 }
 0x144   : > { %1454 = vmatprep.subr.bf16.mxu0 %v2780_v11 }
 0x147   : > { %1455 = vmatpush1.bf16.msra.mxu0 %v2778_v12 }
 0x148   : > { %1456 = vmatprep.subr.bf16.mxu0 %v2783_v13  ;;  %v2807_v13 = vld [vmem:[#allocation9 + $0x1e4] ss:$8 sps:$4 sm:$0xff]  }
 0x14b   : > { %1457 = vmatpush1.bf16.msra.mxu0 %v2781_v14 }
 0x14c   : > { %1458 = vmatprep.subr.bf16.mxu0 %v2786_v15 }
 0x14f   : > { %1459 = vmatpush1.bf16.msra.mxu0 %v2784_v16 }
 0x150   : > { %1460 = vmatprep.subr.bf16.mxu0 %v2789_v17  ;;  %v2805_v17 = vld [vmem:[#allocation9 + $0x1e0] ss:$8 sps:$4 sm:$0xff]  }
 0x153   : > { %1461 = vmatpush1.bf16.msra.mxu0 %v2787_v18 }
 0x154   : > { %1462 = vmatprep.subr.bf16.mxu0 %v2792_v19  ;;  %v2808_v19 = vld [vmem:[#allocation9 + $0x1f0] ss:$8 sps:$4 sm:$0xff]  }
 0x157   : > { %1463 = vmatpush1.bf16.msra.mxu0 %v2790_v20  ;;  %v2810_v20 = vld [vmem:[#allocation9 + $0x1f4] ss:$8 sps:$4 sm:$0xff]  }
 0x158   : > { %1464 = vmatprep.subr.bf16.mxu0 %v2795_v31 }
 0x15b   : > { %1465 = vmatpush1.bf16.msra.mxu0 %v2793_v34 }
 0x15c   : > { %1466 = vmatprep.subr.bf16.mxu0 %v2798_v41 }
 0x15f   : > { %1467 = vmatpush1.bf16.msra.mxu0 %v2796_v45 }
 0x160   : > { %1468 = vmatprep.subr.bf16.mxu0 %v2801_v51 }
 0x163   : > { %1469 = vmatpush1.bf16.msra.mxu0 %v2799_v57 }
 0x164   : > { %1470 = vmatprep.subr.bf16.mxu0 %v2804_v4 }
 0x167   : > { %1471 = vmatpush1.bf16.msra.mxu0 %v2802_v9 }
 0x168   : > { %1472 = vmatprep.subr.bf16.mxu0 %v2807_v13 }
 0x16b   : > { %1473 = vmatpush1.bf16.msra.mxu0 %v2805_v17 }
 0x16c   : > { %1474 = vmatprep.subr.bf16.mxu0 %v2810_v20 }
 0x16f   : > { %1475 = vmatpush1.bf16.msra.mxu0 %v2808_v19 }
 0x209   : > { %v901_v28 = vpop.f32.mrb[0].mxu0 }
 0x20a   : > { %v940_v29 = vadd.f32 %v933_v26, %v901_v28  ;;  %v903_v30 = vpop.f32.mrb[1].mxu0  ;;  %v2813_v28 = vld [vmem:[#allocation9 + $0x210] ss:$8 sps:$4 sm:$0xff]  }
 0x20b   : > { %v941_v32 = vadd.f32 %v937_v27, %v903_v30  ;;  %v905_v33 = vpop.f32.mrb[2].mxu0 }
 0x20c   : > { %v948_v35 = vmax.f32 %v940_v29, 0.0  ;;  %v942_v36 = vadd.f32 %v933_v26, %v905_v33  ;;  %v907_v37 = vpop.f32.mrb[3].mxu0  ;;  %v2816_v29 = vld [vmem:[#allocation9 + $0x204] ss:$8 sps:$4 sm:$0xff]  }
 0x20d   : > { %v949_v38 = vmax.f32 %v941_v32, 0.0  ;;  %v943_v39 = vadd.f32 %v937_v27, %v907_v37  ;;  %v2819_v33 = vld [vmem:[#allocation9 + $0x4] ss:$8 sps:$4 sm:$0xff]   ;;  %1476 = vmatprep.subr.bf16.mxu0 %v2816_v29 }
 0x20e   : > { %v950_v40 = vmax.f32 %v942_v36, 0.0  ;;  %v3426_v37 = vld [vmem:[#allocation9 + $0x324] ss:$8 sps:$4 sm:$0xff]  }
 0x20f   : > { %v2564_v42 = vpack.c.bf16 %v949_v38, %v948_v35  ;;  %v951_v44 = vmax.f32 %v943_v39, 0.0  ;;  %v2814_v35 = vld [vmem:[#allocation9 + $0x200] ss:$8 sps:$4 sm:$0xff]  }
 0x210   : > { %1477 = vmatpush1.bf16.msra.mxu0 %v2814_v35 }
 0x211   : > { %v989_v46 = vshrl.u32 %v2564_v42, 16  ;;  %v2565_v47 = vpack.c.bf16 %v951_v44, %v950_v40  ;;  %v911_v48 = vpop.f32.mrb[4].mxu0  ;;  %v992_v53 = vshll.u32 %v2564_v42, 16  ;;  %2129 = vmatprep.subr.bf16.mxu0 %v3426_v37 }
 0x212   : > { %v944_v49 = vadd.f32 %v933_v26, %v911_v48  ;;  %v913_v50 = vpop.f32.mrb[5].mxu0 }
 0x213   : > { %v991_v52 = vrot.slane %v989_v46, 7  ;;  %v997_v54 = vshrl.u32 %v2565_v47, 16  ;;  %v945_v55 = vadd.f32 %v937_v27, %v913_v50  ;;  %v915_v56 = vpop.f32.mrb[6].mxu0  ;;  %v1000_v58 = vshll.u32 %v2565_v47, 16 }
 0x214   : > { %v952_v59 = vmax.f32 %v944_v49, 0.0  ;;  %v946_v60 = vadd.f32 %v933_v26, %v915_v56  ;;  %v917_v61 = vpop.f32.mrb[7].mxu0 }
 0x215   : > { %v999_v62 = vrot.slane %v997_v54, 7  ;;  %v953_v63 = vmax.f32 %v945_v55, 0.0  ;;  %v947_v1 = vadd.f32 %v937_v27, %v917_v61  ;;  %v994_v2 = vor.u32 %v992_v53, %v991_v52  ;;  %v2811_v27 = vld [vmem:[#allocation9 + $0x214] ss:$8 sps:$4 sm:$0xff]   ;;  %v1089_v55 = vld [vmem:[#allocation3 + $0x38] sm:$0x1] }
 0x216   : > { %v954_v3 = vmax.f32 %v946_v60, 0.0  ;;  %v995_v7 = vrot.slane %v991_v52, 4  ;;  %1499 = vmatprep.subr.bf16.mxu1 %v2811_v27  ;;  %v1084_v60 = vld [vmem:[#allocation3 + $0x30] sm:$0x11] }
 0x217   : > { %v2566_v5 = vpack.c.bf16 %v953_v63, %v952_v59  ;;  %v955_v6 = vmax.f32 %v947_v1, 0.0  ;;  %1023 = vrot.lane.b32.xlu1 %v994_v2, %s3095_s14  ;;  %v1002_v8 = vor.u32 %v1000_v58, %v999_v62  ;;  %v1004_v18 = vrot.slane %v999_v62, 4  ;;  %1500 = vmatpush1.bf16.msra.mxu1 %v2813_v28 }
 0x218   : > { %1730 = vmatprep.subr.bf16.mxu1 %v2819_v33  ;;  %v2827_v33 = vld [vmem:[#allocation9 + $0x14] ss:$8 sps:$4 sm:$0xff]  }
 0x219   : > { %v1006_v10 = vshrl.u32 %v2566_v5, 16  ;;  %v2567_v11 = vpack.c.bf16 %v955_v6, %v954_v3  ;;  %v1003_v12 = vsel %vm3352_vm4, %v995_v7, %v1002_v8  ;;  %v1009_v15 = vshll.u32 %v2566_v5, 16 }
 0x21a   : > { %1025 = vrot.lane.b32.xlu0 %v1003_v12, %s3095_s14 }
 0x21b   : > { %v1008_v14 = vrot.slane %v1006_v10, 7  ;;  %v1015_v16 = vshrl.u32 %v2567_v11, 16  ;;  %v1018_v24 = vshll.u32 %v2567_v11, 16 }
 0x21d   : > { %v1017_v21 = vrot.slane %v1015_v16, 7  ;;  %v1011_v26 = vor.u32 %v1009_v15, %v1008_v14  ;;  %v1013_v31 = vrot.slane %v1008_v14, 4  ;;  %v2817_v15 = vld [vmem:[#allocation9] ss:$8 sps:$4 sm:$0xff]  }
 0x21f   : > { %v1012_v30 = vsel %vm3352_vm4, %v1004_v18, %v1011_v26  ;;  %v1020_v32 = vor.u32 %v1018_v24, %v1017_v21  ;;  %v1022_v36 = vrot.slane %v1017_v21, 4 }
 0x220   : > { %1027 = vrot.lane.b32.xlu1 %v1012_v30, %s3095_s14 }
 0x221   : > { %v1021_v34 = vsel %vm3352_vm4, %v1013_v31, %v1020_v32  ;;  %vm1055_vm4 = vmand %vm1054_vm0, %vm426_vm7  ;;  %vm1078_vm7 = vcmask 1040448  }
 0x222   : > { %1029 = vrot.lane.b32.xlu0 %v1021_v34, %s3095_s14  ;;  %vm1059_vm10 = vmor %vm1058_vm6, %vm1055_vm4 }
 0x223   : > { %vm3444_vm0 = vmand %vm1078_vm7, %vm372_vm2 }
 0x224   : > { %1031 = vrot.lane.b32.xlu1 %v1022_v36, %s3095_s14  ;;  %vm1088_vm4 = vmand %vm1087_vm1, %vm372_vm2  ;;  %vm1439_vm2 = vcmask 130048  }
 0x225   : > { %vm1083_vm6 = vmor %vm3448_vm3, %vm3444_vm0 }
 0x289   : > { %v1024_v38 = vpop.permute.xlu1 %1023 }
 0x28a   : > { %v1033_v39 = vrot.slane %v1024_v38, 4 }
 0x28c   : > { %v1039_v40 = vsel %vm1038_vm8, %v1033_v39, %v1024_v38  ;;  %v1066_v41 = vsel %vm1064_vm9, %v1033_v39, %v1065_v43  ;;  %v1026_v42 = vpop.permute.xlu0 %1025  ;;  %v3499_v39 = vld [vmem:[#allocation9 + $0x320] ss:$8 sps:$4 sm:$0xff]  }
 0x28d   : > { %v1061_v45 = vsel %vm1059_vm10, %v1039_v40, 0  ;;  %1067 = vst [vmem:[#allocation3 + $0x8] sm:$0xf] %v1066_v41  ;;  %v1034_v46 = vrot.slane %v1026_v42, 4 }
 0x28e   : > { %1062 = vst [vmem:[#allocation3] sm:$0xff] %v1061_v45 }
 0x28f   : > { %v1040_v47 = vsel %vm1038_vm8, %v1034_v46, %v1026_v42  ;;  %1073 = vst.msk [vmem:[#allocation3 + $0x14] sm:$0xf] %vm1063_vm5, %v1034_v46 }
 0x290   : > { %1071 = vst.msk [vmem:[#allocation3 + $0xc] sm:$0xff] %vm3435_vm12, %v1040_v47 }
 0x292   : > { %v1028_v48 = vpop.permute.xlu1 %1027 }
 0x293   : > { %v1035_v49 = vrot.slane %v1028_v48, 4 }
 0x294   : > { %v1030_v51 = vpop.permute.xlu0 %1029  ;;  %v1093_v57 = vld [vmem:[#allocation3 + $0x8] sm:$0xf] }
 0x295   : > { %v1041_v53 = vsel %vm1038_vm8, %v1035_v49, %v1028_v48  ;;  %1075 = vst.msk [vmem:[#allocation3 + $0x20] sm:$0xf] %vm1063_vm5, %v1035_v49  ;;  %v1036_v54 = vrot.slane %v1030_v51, 4 }
 0x296   : > { %1074 = vst.msk [vmem:[#allocation3 + $0x18] sm:$0xff] %vm3435_vm12, %v1041_v53  ;;  %v1032_v56 = vpop.permute.xlu1 %1031  ;;  %v3457_v58 = vld [vmem:[#allocation3 + $0x14] sm:$0xf] }
 0x297   : > { %v1042_v59 = vsel %vm1038_vm8, %v1036_v54, %v1030_v51  ;;  %1077 = vst.msk [vmem:[#allocation3 + $0x2c] sm:$0xf] %vm1063_vm5, %v1036_v54  ;;  %v1037_v61 = vrot.slane %v1032_v56, 4  ;;  %v3466_v62 = vcombine.low %v1093_v57, %v3457_v58  ;;  %v3468_v63 = vld [vmem:[#allocation3 + $0xc] sm:$0xff]  ;;  %v2831_v51 = vld [vmem:[#allocation9 + $0x24] ss:$8 sps:$4 sm:$0xff]  }
 0x298   : > { %1076 = vst.msk [vmem:[#allocation3 + $0x24] sm:$0xff] %vm3435_vm12, %v1042_v59  ;;  %v3473_v1 = vcombine.low %v1061_v45, %v3468_v63  ;;  %v3476_v2 = vcombine.high %v1061_v45, %v3468_v63  ;;  %v2825_v45 = vld [vmem:[#allocation9 + $0x10] ss:$8 sps:$4 sm:$0xff]  }
 0x299   : > { %v1043_v3 = vsel %vm1038_vm8, %v1037_v61, %v1032_v56  ;;  %v1090_v4 = vsel %vm1088_vm4, %v1037_v61, %v1089_v55  ;;  %v1232_v5 = vshll.u32 %v3466_v62, 16  ;;  %v1230_v16 = vshrl.u32 %v3466_v62, 16  ;;  %v2829_v56 = vld [vmem:[#allocation9 + $0x20] ss:$8 sps:$4 sm:$0xff]  }
 0x29a   : > { %v1085_v6 = vsel %vm1083_vm6, %v1043_v3, %v1084_v60  ;;  %1091 = vst [vmem:[#allocation3 + $0x38] sm:$0x1] %v1090_v4  ;;  %v1220_v7 = vshll.u32 %v3476_v2, 16  ;;  %v1208_v8 = vshll.u32 %v3473_v1, 16  ;;  %v1218_v18 = vshrl.u32 %v3476_v2, 16 }
 0x29b   : > { %1086 = vst [vmem:[#allocation3 + $0x30] sm:$0x11] %v1085_v6  ;;  %v1234_v9 = vrot.slane %v1232_v5, 1  ;;  %v1206_v19 = vshrl.u32 %v3473_v1, 16  ;;  %v2836_v60 = vld [vmem:[#allocation9 + $0x34] ss:$8 sps:$4 sm:$0xff]  }
 0x29c   : > { %v1222_v11 = vrot.slane %v1220_v7, 1  ;;  %v1210_v12 = vrot.slane %v1208_v8, 1  ;;  %v2834_v5 = vld [vmem:[#allocation9 + $0x30] ss:$8 sps:$4 sm:$0xff]   ;;  %v2842_v6 = vld [vmem:[#allocation9 + $0x44] ss:$8 sps:$4 sm:$0xff]  }
 0x29d   : > { %v1235_v24 = vor.u32 %v1234_v9, %v1230_v16  ;;  %v1837_v7 = vld [vmem:[#allocation3 + $0x8] sm:$0xe]  ;;  %v2840_v9 = vld [vmem:[#allocation9 + $0x40] ss:$8 sps:$4 sm:$0xff]   ;;  %v2849_v16 = vld [vmem:[#allocation9 + $0x64] ss:$8 sps:$4 sm:$0xff]  }
 0x29e   : > { %v3482_v10 = vld [vmem:[#allocation3 + $0x20] ss:$12 sps:$4 sm:$0xff]   ;;  %v1223_v27 = vor.u32 %v1222_v11, %v1218_v18  ;;  %v1211_v28 = vor.u32 %v1210_v12, %v1206_v19  ;;  %v2513_v8 = vcombine.low %v1837_v7, %v3457_v58  ;;  %v2846_v11 = vld [vmem:[#allocation9 + $0x54] ss:$8 sps:$4 sm:$0xff]  }
 0x29f   : > { %v3484_v13 = vld [vmem:[#allocation3 + $0x18] ss:$12 sps:$4 sm:$0xff]   ;;  %v3486_v14 = vld [vmem:[#allocation3 + $0x1c] ss:$12 sps:$4 sm:$0xff]   ;;  %v1237_v17 = vshll.u32 %v3482_v10, 16  ;;  %v1257_v46 = vshrl.u32 %v3482_v10, 16 }
 0x2a0   : > { %v1225_v20 = vshll.u32 %v3486_v14, 16  ;;  %v1213_v21 = vshll.u32 %v3484_v13, 16  ;;  %v1249_v42 = vshrl.u32 %v3486_v14, 16  ;;  %v1888_v48 = vrot.slane %v3482_v10, 1  ;;  %v2852_v18 = vld [vmem:[#allocation9 + $0x74] ss:$8 sps:$4 sm:$0xff]  }
 0x2a1   : > { %v1239_v26 = vrot.slane %v1237_v17, 1  ;;  %v2832_v30 = vld [vmem:[#allocation3 + $0x38] ss:$0 sps:$4 sm:$0x11]   ;;  %v1241_v57 = vshrl.u32 %v3484_v13, 16  ;;  %v1887_v12 = vrot.slane %v2513_v8, 1 }
 0x2a2   : > { %v1134_v29 = vld [vmem:[#allocation3 + $0x30] sm:$0x11]  ;;  %v1227_v31 = vrot.slane %v1225_v20, 1  ;;  %v1215_v32 = vrot.slane %v1213_v21, 1  ;;  %v1261_v43 = vshll.u32 %v2832_v30, 16  ;;  %v1894_v38 = vrot.slane %v2832_v30, 1 }
 0x2a3   : > { %v3494_v34 = vcombine.high %v1134_v29, %v1134_v29  ;;  %v3496_v35 = vcombine.low %v1134_v29, %v1134_v29  ;;  %v1240_v36 = vsel %vm485_vm11, %v1235_v24, %v1239_v26  ;;  %v1259_v52 = vor.u32 %v1257_v46, %v1239_v26  ;;  %v2847_v17 = vld [vmem:[#allocation9 + $0x60] ss:$8 sps:$4 sm:$0xff]   ;;  %v2850_v19 = vld [vmem:[#allocation9 + $0x70] ss:$8 sps:$4 sm:$0xff]   ;;  %v2855_v58 = vld [vmem:[#allocation9 + $0x84] ss:$8 sps:$4 sm:$0xff]  }
 0x2a4   : > { %2473 = vmatmul.mubr.msk.bf16.vlgmr.msra.gmra.mrb[0].mxu1 %vm1439_vm2, %v1240_v36  ;;  %v1228_v40 = vsel %vm485_vm11, %v1223_v27, %v1227_v31  ;;  %v1216_v41 = vsel %vm485_vm11, %v1211_v28, %v1215_v32  ;;  %v1251_v49 = vor.u32 %v1249_v42, %v1227_v31  ;;  %v1263_v53 = vrot.slane %v1261_v43, 1  ;;  %v2853_v20 = vld [vmem:[#allocation9 + $0x80] ss:$8 sps:$4 sm:$0xff]   ;;  %v2858_v21 = vld [vmem:[#allocation9 + $0x94] ss:$8 sps:$4 sm:$0xff]  }
 0x2a5   : > { %v1253_v44 = vshll.u32 %v3494_v34, 16  ;;  %1731 = vmatpush1.bf16.msra.mxu1 %v2817_v15  ;;  %1478 = vmatprep.mubr.bf16.mxu0 %v1228_v40  ;;  %v1245_v47 = vshll.u32 %v3496_v35, 16  ;;  %v3512_v54 = vsel %vm784_vm13, %v1888_v48, %v1894_v38  ;;  %v1243_v3 = vor.u32 %v1241_v57, %v1215_v32  ;;  %v2856_v24 = vld [vmem:[#allocation9 + $0x90] ss:$8 sps:$4 sm:$0xff]   ;;  %v2861_v26 = vld [vmem:[#allocation9 + $0xa4] ss:$8 sps:$4 sm:$0xff]  }
 0x2a6   : > { %1479 = vmatmul.mubr.bf16.vlgmr.msra.gmra.mrb[8].mxu0 %v1216_v41  ;;  %1732 = vmatprep.subr.bf16.mxu1 %v2827_v33  ;;  %v1264_v61 = vsel %vm485_vm11, %v1259_v52, %v1263_v53  ;;  %v1889_v15 = vsel %vm784_vm13, %v1887_v12, %v1888_v48  ;;  %v2859_v27 = vld [vmem:[#allocation9 + $0xa0] ss:$8 sps:$4 sm:$0xff]   ;;  %v2864_v28 = vld [vmem:[#allocation9 + $0xb4] ss:$8 sps:$4 sm:$0xff]   ;;  %v2862_v29 = vld [vmem:[#allocation9 + $0xb0] ss:$8 sps:$4 sm:$0xff]  }
 0x2a7   : > { %v1255_v50 = vrot.slane %v1253_v44, 1  ;;  %1541 = vmatprep.mubr.bf16.mxu1 %v3093_v0  ;;  %2130 = vmatpush1.bf16.msra.mxu0 %v3499_v39  ;;  %v1247_v59 = vrot.slane %v1245_v47, 1  ;;  %v2867_v30 = vld [vmem:[#allocation9 + $0xc4] ss:$8 sps:$4 sm:$0xff]   ;;  %v2865_v31 = vld [vmem:[#allocation9 + $0xc0] ss:$8 sps:$4 sm:$0xff]  }
 0x2a8   : > { %v2870_v32 = vld [vmem:[#allocation9 + $0xd4] ss:$8 sps:$4 sm:$0xff]   ;;  %v2868_v33 = vld [vmem:[#allocation9 + $0xd0] ss:$8 sps:$4 sm:$0xff]   ;;  %v2873_v36 = vld [vmem:[#allocation9 + $0xe4] ss:$8 sps:$4 sm:$0xff]  }
 0x2a9   : > { %v1256_v55 = vsel %vm485_vm11, %v1251_v49, %v1255_v50  ;;  %1733 = vmatpush1.bf16.msra.mxu1 %v2825_v45  ;;  %v1248_v4 = vsel %vm485_vm11, %v1243_v3, %v1247_v59  ;;  %v2871_v43 = vld [vmem:[#allocation9 + $0xe0] ss:$8 sps:$4 sm:$0xff]   ;;  %v2876_v38 = vld [vmem:[#allocation9 + $0xf4] ss:$8 sps:$4 sm:$0xff]   ;;  %v2874_v40 = vld [vmem:[#allocation9 + $0xf0] ss:$8 sps:$4 sm:$0xff]  }
 0x2aa   : > { %1488 = vmatprep.mubr.bf16.mxu0 %v1256_v55  ;;  %1734 = vmatprep.subr.bf16.mxu1 %v2831_v51  ;;  %v2879_v41 = vld [vmem:[#allocation9 + $0x104] ss:$8 sps:$4 sm:$0xff]   ;;  %v2877_v42 = vld [vmem:[#allocation9 + $0x100] ss:$8 sps:$4 sm:$0xff]   ;;  %v2885_v46 = vld [vmem:[#allocation9 + $0x234] ss:$8 sps:$4 sm:$0xff]  }
 0x2ab   : > { %v2882_v44 = vld [vmem:[#allocation9 + $0x224] ss:$8 sps:$4 sm:$0xff]   ;;  %v2880_v45 = vld [vmem:[#allocation9 + $0x220] ss:$8 sps:$4 sm:$0xff]   ;;  %v2883_v47 = vld [vmem:[#allocation9 + $0x230] ss:$8 sps:$4 sm:$0xff]  }
 0x2ac   : > { %2474 = vmatmul.mubr.msk.bf16.gmra.mrb[4].mxu1 %vm1439_vm2, %v1264_v61  ;;  %v3531_v48 = vld [vmem:[#allocation3] sm:$0xee]  ;;  %v1885_v50 = vrot.slane %v3486_v14, 1  ;;  %v2886_v51 = vld [vmem:[#allocation9 + $0x240] ss:$8 sps:$4 sm:$0xff]  }
 0x2ad   : > { %1735 = vmatpush1.bf16.msra.mxu1 %v2829_v56  ;;  %1762 = vmatprep.mubr.bf16.mxu1 %v3476_v2  ;;  %v2844_v2 = vld [vmem:[#allocation9 + $0x50] ss:$8 sps:$4 sm:$0xff]   ;;  %v2512_v49 = vcombine.high %v3531_v48, %v3468_v63  ;;  %v2893_v53 = vld [vmem:[#allocation9 + $0x254] ss:$8 sps:$4 sm:$0xff]   ;;  %v2896_v56 = vld [vmem:[#allocation9 + $0x264] ss:$8 sps:$4 sm:$0xff]  }
 0x2ae   : > { %1489 = vmatmul.mubr.bf16.gmra.mrb[12].mxu0 %v1248_v4  ;;  %1736 = vmatprep.subr.bf16.mxu1 %v2836_v60  ;;  %v2891_v55 = vld [vmem:[#allocation9 + $0x250] ss:$8 sps:$4 sm:$0xff]   ;;  %v2894_v57 = vld [vmem:[#allocation9 + $0x260] ss:$8 sps:$4 sm:$0xff]   ;;  %v2899_v59 = vld [vmem:[#allocation9 + $0x274] ss:$8 sps:$4 sm:$0xff]  }
 0x2af   : > { %2161 = vmatprep.mubr.bf16.mxu0 %v3093_v0  ;;  %v1884_v52 = vrot.slane %v2512_v49, 1  ;;  %v2897_v60 = vld [vmem:[#allocation9 + $0x270] ss:$8 sps:$4 sm:$0xff]   ;;  %v2902_v61 = vld [vmem:[#allocation9 + $0x284] ss:$8 sps:$4 sm:$0xff]  }
 0x2b0   : > { %v2900_v3 = vld [vmem:[#allocation9 + $0x280] ss:$8 sps:$4 sm:$0xff]   ;;  %v2903_v4 = vld [vmem:[#allocation9 + $0x290] ss:$8 sps:$4 sm:$0xff]   ;;  %v2911_v7 = vld [vmem:[#allocation9 + $0x2b4] ss:$8 sps:$4 sm:$0xff]  }
 0x2b1   : > { %1737 = vmatpush1.bf16.msra.mxu1 %v2834_v5  ;;  %v2908_v5 = vld [vmem:[#allocation9 + $0x2a4] ss:$8 sps:$4 sm:$0xff]   ;;  %v2909_v8 = vld [vmem:[#allocation9 + $0x2b0] ss:$8 sps:$4 sm:$0xff]   ;;  %v2917_v12 = vld [vmem:[#allocation9 + $0x2d4] ss:$8 sps:$4 sm:$0xff]  }
 0x2b2   : > { %1738 = vmatprep.subr.bf16.mxu1 %v2842_v6  ;;  %v2906_v6 = vld [vmem:[#allocation9 + $0x2a0] ss:$8 sps:$4 sm:$0xff]  }
 0x2b5   : > { %1739 = vmatpush1.bf16.msra.mxu1 %v2840_v9  ;;  %v2914_v9 = vld [vmem:[#allocation9 + $0x2c4] ss:$8 sps:$4 sm:$0xff]  }
 0x2b6   : > { %2548 = vmatmul.mubr.msk.bf16.vlgmr.msra.gmra.mrb[16].mxu0 %vm1439_vm2, %v1889_v15  ;;  %1740 = vmatprep.subr.bf16.mxu1 %v2846_v11  ;;  %v2912_v11 = vld [vmem:[#allocation9 + $0x2c0] ss:$8 sps:$4 sm:$0xff]   ;;  %v2915_v15 = vld [vmem:[#allocation9 + $0x2d0] ss:$8 sps:$4 sm:$0xff]  }
 0x2b9   : > { %1741 = vmatpush1.bf16.msra.mxu1 %v2844_v2  ;;  %v2920_v2 = vld [vmem:[#allocation9 + $0x2e4] ss:$8 sps:$4 sm:$0xff]  }
 0x2ba   : > { %1742 = vmatprep.subr.bf16.mxu1 %v2849_v16  ;;  %v2918_v16 = vld [vmem:[#allocation9 + $0x2e0] ss:$8 sps:$4 sm:$0xff]  }
 0x2bd   : > { %1743 = vmatpush1.bf16.msra.mxu1 %v2847_v17  ;;  %v2923_v17 = vld [vmem:[#allocation9 + $0x2f4] ss:$8 sps:$4 sm:$0xff]  }
 0x2be   : > { %1744 = vmatprep.subr.bf16.mxu1 %v2852_v18  ;;  %v2921_v18 = vld [vmem:[#allocation9 + $0x2f0] ss:$8 sps:$4 sm:$0xff]  }
 0x2c1   : > { %1745 = vmatpush1.bf16.msra.mxu1 %v2850_v19  ;;  %v2926_v19 = vld [vmem:[#allocation9 + $0x304] ss:$8 sps:$4 sm:$0xff]  }
 0x2c2   : > { %1746 = vmatprep.subr.bf16.mxu1 %v2855_v58  ;;  %v2924_v58 = vld [vmem:[#allocation9 + $0x300] ss:$8 sps:$4 sm:$0xff]  }
 0x2c5   : > { %1747 = vmatpush1.bf16.msra.mxu1 %v2853_v20  ;;  %v2929_v20 = vld [vmem:[#allocation9 + $0x314] ss:$8 sps:$4 sm:$0xff]  }
 0x2c6   : > { %1748 = vmatprep.subr.bf16.mxu1 %v2858_v21  ;;  %v2511_v21 = vcombine.low %v3531_v48, %v3468_v63  ;;  %v1890_v63 = vrot.slane %v3496_v35, 1 }
 0x2c9   : > { %1749 = vmatpush1.bf16.msra.mxu1 %v2856_v24  ;;  %v2927_v24 = vld [vmem:[#allocation9 + $0x310] ss:$8 sps:$4 sm:$0xff]  }
 0x2ca   : > { %1750 = vmatprep.subr.bf16.mxu1 %v2861_v26  ;;  %v1882_v26 = vrot.slane %v3484_v13, 1 }
 0x2cd   : > { %1751 = vmatpush1.bf16.msra.mxu1 %v2859_v27  ;;  %v1892_v27 = vrot.slane %v3494_v34, 1 }
 0x2ce   : > { %1752 = vmatprep.subr.bf16.mxu1 %v2864_v28  ;;  %v1881_v28 = vrot.slane %v2511_v21, 1 }
 0x2d1   : > { %1753 = vmatpush1.bf16.msra.mxu1 %v2862_v29  ;;  %v1883_v29 = vsel %vm784_vm13, %v1881_v28, %v1882_v26 }
 0x2d2   : > { %1754 = vmatprep.subr.bf16.mxu1 %v2867_v30  ;;  %v1893_v30 = vsel %vm784_vm13, %v1885_v50, %v1892_v27 }
 0x2d5   : > { %1755 = vmatpush1.bf16.msra.mxu1 %v2865_v31 }
 0x2d6   : > { %1756 = vmatprep.subr.bf16.mxu1 %v2870_v32 }
 0x2d9   : > { %1757 = vmatpush1.bf16.msra.mxu1 %v2868_v33 }
 0x2da   : > { %1758 = vmatprep.subr.bf16.mxu1 %v2873_v36 }
 0x2dd   : > { %1759 = vmatpush1.bf16.msra.mxu1 %v2871_v43 }
 0x2de   : > { %1760 = vmatprep.subr.bf16.mxu1 %v2876_v38 }
 0x2e1   : > { %1761 = vmatpush1.bf16.msra.mxu1 %v2874_v40 }
 0x2e2   : > { %1783 = vmatprep.subr.bf16.mxu1 %v2879_v41  ;;  %v2190_v41 = vld [vmem:[%s3622_s6] sm:$0x3] }
 0x2e4   : > { %1763 = vmatmul.mubr.bf16.vlgmr.msra.gmra.mrb[0].mxu1 %v3473_v1  ;;  %v2888_v1 = vld [vmem:[#allocation9 + $0x244] ss:$8 sps:$4 sm:$0xff]  }
 0x2e5   : > { %1772 = vmatprep.mubr.bf16.mxu1 %v3486_v14  ;;  %1784 = vmatpush1.bf16.msra.mxu1 %v2877_v42 }
 0x2e6   : > { %2076 = vmatprep.subr.bf16.mxu1 %v2882_v44 }
 0x2ec   : > { %1773 = vmatmul.mubr.bf16.gmra.mrb[4].mxu1 %v3484_v13  ;;  %v1891_v13 = vsel %vm784_vm13, %v1882_v26, %v1890_v63 }
 0x2ed   : > { %1815 = vmatprep.mubr.bf16.mxu1 %v3093_v0 }
 0x2f4   : > { %2509 = vmatmul.mubr.msk.bf16.vlgmr.msra.gmra.mrb[0].mxu1 %vm1439_vm2, %v3466_v62  ;;  %v1886_v62 = vsel %vm784_vm13, %v1884_v52, %v1885_v50 }
 0x2f5   : > { %2077 = vmatpush1.bf16.msra.mxu1 %v2880_v45  ;;  %1825 = vmatprep.mubr.bf16.mxu1 %v3093_v0 }
 0x2f6   : > { %2078 = vmatprep.subr.bf16.mxu1 %v2885_v46  ;;  %v2199_v46 = vrot.slane %v2190_v41, %v936_v25 }
 0x2f9   : > { %2079 = vmatpush1.bf16.msra.mxu1 %v2883_v47 }
 0x2fa   : > { %2080 = vmatprep.subr.bf16.mxu1 %v2888_v1 }
 0x2fc   : > { %2510 = vmatmul.mubr.msk.bf16.gmra.mrb[4].mxu1 %vm1439_vm2, %v3482_v10  ;;  %v2905_v10 = vld [vmem:[#allocation9 + $0x294] ss:$8 sps:$4 sm:$0xff]  }
 0x2fd   : > { %2081 = vmatpush1.bf16.msra.mxu1 %v2886_v51  ;;  %2108 = vmatprep.mubr.bf16.mxu1 %v1886_v62 }
 0x2fe   : > { %2082 = vmatprep.subr.bf16.mxu1 %v2893_v53 }
 0x301   : > { %2083 = vmatpush1.bf16.msra.mxu1 %v2891_v55 }
 0x302   : > { %2084 = vmatprep.subr.bf16.mxu1 %v2896_v56 }
 0x305   : > { %2085 = vmatpush1.bf16.msra.mxu1 %v2894_v57 }
 0x306   : > { %2086 = vmatprep.subr.bf16.mxu1 %v2899_v59 }
 0x309   : > { %2087 = vmatpush1.bf16.msra.mxu1 %v2897_v60 }
 0x30a   : > { %2088 = vmatprep.subr.bf16.mxu1 %v2902_v61 }
 0x30d   : > { %2089 = vmatpush1.bf16.msra.mxu1 %v2900_v3 }
 0x30e   : > { %2090 = vmatprep.subr.bf16.mxu1 %v2905_v10 }
 0x311   : > { %2091 = vmatpush1.bf16.msra.mxu1 %v2903_v4 }
 0x312   : > { %2092 = vmatprep.subr.bf16.mxu1 %v2908_v5 }
 0x315   : > { %2093 = vmatpush1.bf16.msra.mxu1 %v2906_v6 }
 0x316   : > { %2094 = vmatprep.subr.bf16.mxu1 %v2911_v7 }
 0x319   : > { %2095 = vmatpush1.bf16.msra.mxu1 %v2909_v8 }
 0x31a   : > { %2096 = vmatprep.subr.bf16.mxu1 %v2914_v9 }
 0x31d   : > { %2097 = vmatpush1.bf16.msra.mxu1 %v2912_v11 }
 0x31e   : > { %2098 = vmatprep.subr.bf16.mxu1 %v2917_v12 }
 0x321   : > { %2099 = vmatpush1.bf16.msra.mxu1 %v2915_v15 }
 0x322   : > { %2100 = vmatprep.subr.bf16.mxu1 %v2920_v2 }
 0x325   : > { %2101 = vmatpush1.bf16.msra.mxu1 %v2918_v16 }
 0x326   : > { %2102 = vmatprep.subr.bf16.mxu1 %v2923_v17 }
 0x329   : > { %2103 = vmatpush1.bf16.msra.mxu1 %v2921_v18 }
 0x32a   : > { %2104 = vmatprep.subr.bf16.mxu1 %v2926_v19 }
 0x32d   : > { %2105 = vmatpush1.bf16.msra.mxu1 %v2924_v58 }
 0x32e   : > { %2106 = vmatprep.subr.bf16.mxu1 %v2929_v20 }
 0x331   : > { %2107 = vmatpush1.bf16.msra.mxu1 %v2927_v24 }
 0x332   : > { %2573 = vmatprep.subr.bf16.mxu1 %v3426_v37 }
 0x334   : > { %2109 = vmatmul.mubr.bf16.vlgmr.msra.gmra.mrb[0].mxu1 %v1883_v29 }
 0x335   : > { %2118 = vmatprep.mubr.bf16.mxu1 %v1893_v30  ;;  %2574 = vmatpush1.bf16.msra.mxu1 %v3499_v39 }
 0x33c   : > { %2119 = vmatmul.mubr.bf16.gmra.mrb[4].mxu1 %v1891_v13 }
 0x33d   : > { %2171 = vmatprep.mubr.bf16.mxu1 %v3093_v0 }
 0x348   : > { %2549 = vmatmul.mubr.msk.bf16.vlgmr.msra.gmra.mrb[4].mxu1 %vm1439_vm2, %v3512_v54  ;;  %v2195_v54 = vrot.slane %v2190_v41, %v932_v23 }
 0x379   : > { %v1480_v37 = vpop.f32.mrb[8].mxu0 }
 0x37a   : > { %v1482_v34 = vpop.f32.mrb[9].mxu0 }
 0x37b   : > { %v1484_v31 = vpop.f32.mrb[10].mxu0 }
 0x37c   : > { %v1486_v32 = vpop.f32.mrb[11].mxu0 }
 0x381   : > { %v1490_v14 = vpop.f32.mrb[12].mxu0 }
 0x382   : > { %v1492_v33 = vpop.f32.mrb[13].mxu0 }
 0x383   : > { %v1494_v36 = vpop.f32.mrb[14].mxu0 }
 0x384   : > { %v1496_v43 = vpop.f32.mrb[15].mxu0 }
 0x389   : > { %v2163_v38 = vpop.f32.mrb[16].mxu0 }
 0x38a   : > { %v2165_v39 = vpop.f32.mrb[17].mxu0 }
 0x38b   : > { %v2167_v40 = vpop.f32.mrb[18].mxu0 }
 0x38c   : > { %v2169_v35 = vpop.f32.mrb[19].mxu0 }
 0x407   : > { %v2110_v0 = vpop.f32.mrb[0].mxu1 }
 0x408   : > { %v2575_v42 = vadd.f32 %v2110_v0, %v1480_v37  ;;  %v2112_v44 = vpop.f32.mrb[1].mxu1 }
 0x409   : > { %v2577_v45 = vadd.f32 %v2112_v44, %v1482_v34  ;;  %v2114_v47 = vpop.f32.mrb[2].mxu1 }
 0x40a   : > { %v2576_v48 = vadd.f32 %v2575_v42, %v2163_v38  ;;  %v2579_v1 = vadd.f32 %v2114_v47, %v1484_v31  ;;  %v2116_v49 = vpop.f32.mrb[3].mxu1 }
 0x40b   : > { %v2578_v50 = vadd.f32 %v2577_v45, %v2165_v39  ;;  %v2581_v51 = vadd.f32 %v2116_v49, %v1486_v32 }
 0x40c   : > { %v2202_v52 = vadd.f32 %v2576_v48, %v2195_v54  ;;  %v2580_v53 = vadd.f32 %v2579_v1, %v2167_v40 }
 0x40d   : > { %v2203_v62 = vadd.f32 %v2578_v50, %v2199_v46  ;;  %v2582_v55 = vadd.f32 %v2581_v51, %v2169_v35 }
 0x40e   : > { %v2210_v56 = vmax.f32 %v2202_v52, 0.0  ;;  %v2204_v57 = vadd.f32 %v2580_v53, %v2195_v54 }
 0x40f   : > { %v2211_v59 = vmax.f32 %v2203_v62, 0.0  ;;  %v2205_v23 = vadd.f32 %v2582_v55, %v2199_v46 }
 0x410   : > { %v2212_v60 = vmax.f32 %v2204_v57, 0.0 }
 0x411   : > { %v2568_v61 = vpack.c.bf16 %v2211_v59, %v2210_v56  ;;  %v2213_v3 = vmax.f32 %v2205_v23, 0.0 }
 0x413   : > { %2242 = vst [vmem:[%s325_s18] sm:$0xff] %v2568_v61  ;;  %v2569_v22 = vpack.c.bf16 %v2213_v3, %v2212_v60 }
 0x415   : > { %2243 = vst [vmem:[%s325_s18 + $0x8] sm:$0xff] %v2569_v22 }
 0x41b   : > { %v2173_v25 = vpop.f32.mrb[4].mxu1 }
 0x41c   : > { %v2583_v10 = vadd.f32 %v2173_v25, %v1490_v14  ;;  %v2175_v4 = vpop.f32.mrb[5].mxu1 }
 0x41d   : > { %v2584_v5 = vadd.f32 %v2175_v4, %v1492_v33  ;;  %v2177_v6 = vpop.f32.mrb[6].mxu1 }
 0x41e   : > { %v2206_v7 = vadd.f32 %v2583_v10, %v2195_v54  ;;  %v2585_v8 = vadd.f32 %v2177_v6, %v1494_v36  ;;  %v2179_v9 = vpop.f32.mrb[7].mxu1 }
 0x41f   : > { %v2207_v11 = vadd.f32 %v2584_v5, %v2199_v46  ;;  %v2586_v12 = vadd.f32 %v2179_v9, %v1496_v43 }
 0x420   : > { %v2214_v15 = vmax.f32 %v2206_v7, 0.0  ;;  %v2208_v2 = vadd.f32 %v2585_v8, %v2195_v54 }
 0x421   : > { %v2215_v16 = vmax.f32 %v2207_v11, 0.0  ;;  %v2209_v17 = vadd.f32 %v2586_v12, %v2199_v46 }
 0x422   : > { %v2216_v18 = vmax.f32 %v2208_v2, 0.0 }
 0x423   : > { %v2570_v19 = vpack.c.bf16 %v2215_v16, %v2214_v15  ;;  %v2217_v58 = vmax.f32 %v2209_v17, 0.0 }
 0x425   : > { %2244 = vst [vmem:[%s325_s18 + $0x10] sm:$0xff] %v2570_v19  ;;  %v2571_v20 = vpack.c.bf16 %v2217_v58, %v2216_v18 }
 0x427   : > { %2245 = vst [vmem:[%s325_s18 + $0x18] sm:$0xff] %v2571_v20 }
 0x428   : > { %3029 = shalt.err (!%p3026_p1)
}
 0x429   : > { %s3030_s21 = scalar_lea.hbm %s3571_s29, 512  ;;  %s3034_s22 = scalar_lea.hbm %s3623_s7, 1024 }
 0x42a   : > { %p3031_p13 = scmp.ne.s32.totalorder %s3571_s29, %s3030_s21  ;;  %p3035_p4 = scmp.lt.u32.totalorder %s3571_s29, %s3623_s7 }
 0x42b   : > { %p3036_p5 = scmp.lt.u32.totalorder %s3034_s22, %s3030_s21  ;;  %p3038_p11 = scmp.lt.u32.totalorder %s3030_s21, %s3571_s29 }
 0x42c   : > { %p3032_p6 = pnand %p3031_p13, %p3647_p0 }
 0x42d   : > { %p3037_p8 = por %p3036_p5, %p3035_p4 }
 0x42e   : > { %p3033_p10 = pneg %p3032_p6 }
 0x42f   : > { %p3039_p2 = por %p3038_p11, %p3037_p8 }
 0x431   : > { %p3040_p3 = pnand %p3039_p2, %p3033_p10 }
 0x433   : > { %3043 = shalt.err (!%p3040_p3)
}
 0x434   : > { %s3097_s10 = smov 128  }
 0x435   : > { %2641 = dma.vmem_to_hbm [thread:$0]  (%p3647_p0), %s3566_s13, 512, %s3571_s29, %s2247_s11, %s3097_s10, %s3097_s10, %s3095_s14  }
 0x436 PF: > { %s2275_s28 = sand.u32 1, %s3074_s24   ;;  %p3648_p7 = scmp.ne.s32.totalorder %s3629_s8, 0 }
 0x437   : > { %p3649_p9 = scmp.ge.s32.totalorder %s3086_s27, 2  ;;  %s2276_s15 = scalar_lea.sflag [#allocation6], %s2275_s28 }
 0x439   : > { %p2655_p12 = pnand %p3649_p9, %p3648_p7 }
 0x43b   : > { %3069 = dma.done.wait (!%p2655_p12), %s2276_s15, 512  }
 0x43c   : > { %3071 = vsyncadd (!%p2655_p12), %s2276_s15, 4294966784  ;;  %p21_p1 = scmp.ge.s32.totalorder %s3254_s12, 4   ;;  %s3650_s24 = smov %s3078_s25 }
 0x43d   : > { %s3651_s25 = smov %s3082_s26  ;;  %s3652_s26 = smov %s3270_s17 }
 0x43e   : > { %s3653_s27 = smov %s3254_s12  ;;  %23 = sbr.rel (!%p21_p1) target bundleno = 6 (0x6), region = 105 }
 0x445   :  { %2281 = vsyncpa [#allocation5], 1 }
 0x446   :  { %2283 = vsyncpa [#allocation5 + $0x1], 1 }
 0x447   :  { %2284 = vsyncpa [#allocation8], 1 }
 0x448   :  { %2285 = vsyncpa [#allocation6], 1 }
 0x449   :  { %2287 = vsyncpa [#allocation6 + $0x1], 1 }

</bundles_post_ra>
